<compile_context>
chip_gen: v5e
topology: v5e:2x2
jax: 0.10.0
libtpu: 0.0.40
codegen_flags: <defaults>
</compile_context>

<pallas_src>
import functools

import jax
import jax.numpy as jnp
from jax.experimental import pallas as pl
from jax.experimental.pallas import tpu as pltpu

LANE = 128
ACC_ROWS = 128                    # sublane depth of the per-shard partial sums
TILE_ROWS_DEFAULT = 8192          # 8192 x 128 f32 = 4 MiB per input block
NUM_SHARDS = 2                    # leading "parallel" grid axis (2 TCs on v7x)
SMALL_N = 1 << 20                 # below this, skip the kernel launch
VMEM_LIMIT_BYTES = 32 * 1024 * 1024


def _round_up(x, m):
    return ((x + m - 1) // m) * m


def _dice_loss_ref(inputs, target):
    """Pure-JAX reference / small-N fast path (matches the PyTorch module)."""
    eps = 1e-15
    p = jax.nn.sigmoid(inputs.astype(jnp.float32)).reshape(-1)
    t = target.astype(jnp.float32).reshape(-1)
    inter = jnp.sum(p * t)
    score = 2.0 * (inter + eps) / (jnp.sum(p) + jnp.sum(t) + eps)
    return 1.0 - jnp.clip(score, 0.0, 1.0)


def _dice_kernel(x_ref, t_ref, acc_i_ref, acc_d_ref, *,
                 rows, tile_rows, steps_per_shard, first_masked_block,
                 needs_mask):
    c = pl.program_id(0)          # shard (parallel axis)
    i = pl.program_id(1)          # step within shard (reduction axis)

    # Per-shard accumulator init on the shard's first step.
    @pl.when(i == 0)
    def _():
        acc_i_ref[...] = jnp.zeros_like(acc_i_ref)
        acc_d_ref[...] = jnp.zeros_like(acc_d_ref)

    p = jax.nn.sigmoid(x_ref[...].astype(jnp.float32))
    t = t_ref[...].astype(jnp.float32)

    def accumulate(pv, tv):
        # Fold the (tile_rows, LANE) block into the small accumulators via a
        # leading-axis sum: elementwise VPU adds of whole (ACC_ROWS, LANE)
        # slabs, no cross-lane/sublane XLU work in the steady state.
        ci = (pv * tv).reshape(-1, ACC_ROWS, LANE).sum(axis=0)
        cd = (pv + tv).reshape(-1, ACC_ROWS, LANE).sum(axis=0)
        acc_i_ref[...] += ci[None]
        acc_d_ref[...] += cd[None]

    if needs_mask:
        L = c * steps_per_shard + i          # logical block index

        @pl.when(L < first_masked_block)     # full blocks: no masking cost
        def _():
            accumulate(p, t)

        @pl.when(L >= first_masked_block)    # tail / overhang blocks only
        def _():
            rid = jax.lax.broadcasted_iota(jnp.int32, (tile_rows, LANE), 0)
            valid = (L * tile_rows + rid) < rows
            # select (not multiply): OOB rows of the partial block are
            # undefined VMEM and may be NaN/Inf.
            accumulate(jnp.where(valid, p, 0.0), jnp.where(valid, t, 0.0))
    else:
        accumulate(p, t)


def dice_loss(inputs, target, *, tile_rows=TILE_ROWS_DEFAULT,
              force_kernel=False):
    """JAX/Pallas equivalent of DiceLoss().forward(inputs, target)."""
    x = inputs.reshape(-1)                 # stream in native dtype
    t = target.reshape(-1)
    if t.dtype == jnp.bool_:
        t = t.astype(jnp.float32)
    n = x.shape[0]

    # Small-N fast path: launch + pipeline warm-up dominates for tiny inputs.
    if n < SMALL_N and not force_kernel:
        return _dice_loss_ref(inputs, target)

    # Lane-align by padding with benign values: sigmoid(-1e4) == 0 exactly in
    # f32 and target 0, so the lane tail contributes nothing and the in-kernel
    # mask only needs a row (sublane) compare.
    rem = n % LANE
    if rem:
        pad = LANE - rem
        x = jnp.pad(x, (0, pad), constant_values=-1e4)
        t = jnp.pad(t, (0, pad))
    rows = x.shape[0] // LANE
    x2 = x.reshape(rows, LANE)
    t2 = t.reshape(rows, LANE)

    # Tile size: as large as the VMEM budget allows, clamped for small inputs,
    # kept a multiple of ACC_ROWS so the block folds evenly into accumulators.
    tile_rows = max(ACC_ROWS,
                    min(tile_rows,
                        _round_up(pl.cdiv(rows, NUM_SHARDS), ACC_ROWS)))

    num_valid_blocks = pl.cdiv(rows, tile_rows)
    steps_per_shard = pl.cdiv(num_valid_blocks, NUM_SHARDS)
    total_blocks = NUM_SHARDS * steps_per_shard
    first_masked_block = (num_valid_blocks if rows % tile_rows == 0
                          else rows // tile_rows)
    needs_mask = first_masked_block < total_blocks

    def in_map(c, i):
        # Clamp so overhang steps (grid rounded up to 2 shards) re-read the
        # last valid block instead of DMA-ing out of bounds; their
        # contribution is fully masked in-kernel.
        return (jnp.minimum(c * steps_per_shard + i, num_valid_blocks - 1), 0)

    kernel = functools.partial(
        _dice_kernel, rows=rows, tile_rows=tile_rows,
        steps_per_shard=steps_per_shard,
        first_masked_block=first_masked_block, needs_mask=needs_mask)

    acc_i, acc_d = pl.pallas_call(
        kernel,
        out_shape=(
            jax.ShapeDtypeStruct((NUM_SHARDS, ACC_ROWS, LANE), jnp.float32),
            jax.ShapeDtypeStruct((NUM_SHARDS, ACC_ROWS, LANE), jnp.float32),
        ),
        grid_spec=pltpu.PrefetchScalarGridSpec(
            num_scalar_prefetch=0,
            grid=(NUM_SHARDS, steps_per_shard),
            in_specs=[
                pl.BlockSpec((tile_rows, LANE), in_map),
                pl.BlockSpec((tile_rows, LANE), in_map),
            ],
            out_specs=[
                pl.BlockSpec((1, ACC_ROWS, LANE), lambda c, i: (c, 0, 0)),
                pl.BlockSpec((1, ACC_ROWS, LANE), lambda c, i: (c, 0, 0)),
            ],
        ),
        compiler_params=pltpu.CompilerParams(
            dimension_semantics=("parallel", "arbitrary"),
            vmem_limit_bytes=VMEM_LIMIT_BYTES,
        ),
    )(x2, t2)

    # Tiny final reduction + score in plain JAX.
    eps = jnp.float32(1e-15)
    intersection = jnp.sum(acc_i)
    denom = jnp.sum(acc_d)
    score = 2.0 * (intersection + eps) / (denom + eps)
    return 1.0 - jnp.clip(score, 0.0, 1.0)


if __name__ == "__main__":
    key = jax.random.PRNGKey(0)

    test_shapes = [
        (2, 4, 16, 16),     # NCHW segmentation logits; masked tail path
        (2, 4, 64, 128),    # even multiple of the tile; unmasked path
        (3, 5, 7, 11),      # not lane-aligned; exercises lane pad + row mask
    ]
    for idx, shape in enumerate(test_shapes):
        k1, k2 = jax.random.split(jax.random.fold_in(key, idx))
        x = jax.random.normal(k1, shape, dtype=jnp.float32)              # logits
        y = (jax.random.uniform(k2, shape) > 0.5).astype(jnp.float32)    # binary target

        loss = dice_loss(x, y, force_kernel=True)   # exercise the Pallas kernel
        jax.block_until_ready(loss)

        ref = _dice_loss_ref(x, y)
        assert jnp.allclose(loss, ref, atol=1e-5, rtol=1e-5), (shape, loss, ref)

    # Default path (small-N fast path, no kernel launch).
    k1, k2 = jax.random.split(key)
    x = jax.random.normal(k1, (2, 4, 16, 16), dtype=jnp.float32)
    y = (jax.random.uniform(k2, (2, 4, 16, 16)) > 0.5).astype(jnp.float32)
    loss = dice_loss(x, y)
    jax.block_until_ready(loss)
    assert jnp.allclose(loss, _dice_loss_ref(x, y), atol=1e-5, rtol=1e-5)

    print("KERNEL_OK")
</pallas_src>

<mosaic_0001>
module attributes {stable_mosaic.version = 11 : i64} {
  func.func @_dice_kernel(%arg0: i32, %arg1: i32, %arg2: memref<128x128xf32, #tpu.memory_space<vmem>>, %arg3: memref<128x128xf32, #tpu.memory_space<vmem>>, %arg4: memref<1x128x128xf32, #tpu.memory_space<vmem>>, %arg5: memref<1x128x128xf32, #tpu.memory_space<vmem>>) attributes {dimension_semantics = [#tpu.dimension_semantics<parallel>, #tpu.dimension_semantics<arbitrary>], iteration_bounds = array<i64: 2, 1>, scalar_prefetch = 0 : i64, scratch_operands = 0 : i64, tpu.core_type = #tpu.core_type<tc>, window_params = [{transform_indices = @transform_0, window_bounds = array<i64: 128, 128>}, {transform_indices = @transform_1, window_bounds = array<i64: 128, 128>}, {transform_indices = @transform_2, window_bounds = array<i64: 1, 128, 128>}, {transform_indices = @transform_3, window_bounds = array<i64: 1, 128, 128>}]} {
    %c0_i32 = arith.constant 0 : i32
    %0 = arith.cmpi eq, %arg1, %c0_i32 : i32
    %1 = arith.extui %0 : i1 to i32
    %c0_i32_0 = arith.constant 0 : i32
    %2 = arith.cmpi ne, %1, %c0_i32_0 : i32
    scf.if %2 {
      %cst_8 = arith.constant 0.000000e+00 : f32
      %18 = vector.broadcast %cst_8 : f32 to vector<1x128x128xf32>
      %c0_9 = arith.constant 0 : index
      %c0_10 = arith.constant 0 : index
      %c0_11 = arith.constant 0 : index
      %19 = vector.load %arg4[%c0_9, %c0_10, %c0_11] : memref<1x128x128xf32, #tpu.memory_space<vmem>>, vector<1x128x128xf32>
      tpu.vector_store %arg4[%c0_9, %c0_10, %c0_11], %18 {strides = array<i32>} : memref<1x128x128xf32, #tpu.memory_space<vmem>>, vector<1x128x128xf32>,
      %cst_12 = arith.constant 0.000000e+00 : f32
      %20 = vector.broadcast %cst_12 : f32 to vector<1x128x128xf32>
      %c0_13 = arith.constant 0 : index
      %c0_14 = arith.constant 0 : index
      %c0_15 = arith.constant 0 : index
      %21 = vector.load %arg5[%c0_13, %c0_14, %c0_15] : memref<1x128x128xf32, #tpu.memory_space<vmem>>, vector<1x128x128xf32>
      tpu.vector_store %arg5[%c0_13, %c0_14, %c0_15], %20 {strides = array<i32>} : memref<1x128x128xf32, #tpu.memory_space<vmem>>, vector<1x128x128xf32>,
    } else {
    }
    %c0 = arith.constant 0 : index
    %c0_1 = arith.constant 0 : index
    %3 = vector.load %arg2[%c0, %c0_1] : memref<128x128xf32, #tpu.memory_space<vmem>>, vector<128x128xf32>
    %4 = arith.negf %3 : vector<128x128xf32>
    %5 = math.exp %4 : vector<128x128xf32>
    %cst = arith.constant 1.000000e+00 : f32
    %6 = vector.broadcast %cst : f32 to vector<128x128xf32>
    %7 = arith.addf %6, %5 : vector<128x128xf32>
    %8 = arith.divf %6, %7 : vector<128x128xf32>
    %c0_2 = arith.constant 0 : index
    %c0_3 = arith.constant 0 : index
    %9 = vector.load %arg3[%c0_2, %c0_3] : memref<128x128xf32, #tpu.memory_space<vmem>>, vector<128x128xf32>
    %c1_i32 = arith.constant 1 : i32
    %10 = arith.muli %arg0, %c1_i32 : i32
    %11 = arith.addi %10, %arg1 : i32
    %c0_i32_4 = arith.constant 0 : i32
    %12 = arith.cmpi slt, %11, %c0_i32_4 : i32
    %13 = arith.extui %12 : i1 to i32
    %c0_i32_5 = arith.constant 0 : i32
    %14 = arith.cmpi ne, %13, %c0_i32_5 : i32
    scf.if %14 {
      %18 = arith.mulf %8, %9 : vector<128x128xf32>
      %19 = vector.shape_cast %18 : vector<128x128xf32> to vector<1x128x128xf32>
      %cst_8 = arith.constant dense<0.000000e+00> : vector<128x128xf32>
      %20 = vector.multi_reduction <add>, %19, %cst_8 [0] : vector<1x128x128xf32> to vector<128x128xf32>
      %21 = arith.addf %8, %9 : vector<128x128xf32>
      %22 = vector.shape_cast %21 : vector<128x128xf32> to vector<1x128x128xf32>
      %cst_9 = arith.constant dense<0.000000e+00> : vector<128x128xf32>
      %23 = vector.multi_reduction <add>, %22, %cst_9 [0] : vector<1x128x128xf32> to vector<128x128xf32>
      %c0_10 = arith.constant 0 : index
      %c0_11 = arith.constant 0 : index
      %c0_12 = arith.constant 0 : index
      %24 = vector.load %arg4[%c0_10, %c0_11, %c0_12] : memref<1x128x128xf32, #tpu.memory_space<vmem>>, vector<1x128x128xf32>
      %25 = vector.shape_cast %20 : vector<128x128xf32> to vector<1x128x128xf32>
      %26 = arith.addf %24, %25 : vector<1x128x128xf32>
      %c0_13 = arith.constant 0 : index
      %c0_14 = arith.constant 0 : index
      %c0_15 = arith.constant 0 : index
      %27 = vector.load %arg4[%c0_13, %c0_14, %c0_15] : memref<1x128x128xf32, #tpu.memory_space<vmem>>, vector<1x128x128xf32>
      tpu.vector_store %arg4[%c0_13, %c0_14, %c0_15], %26 {strides = array<i32>} : memref<1x128x128xf32, #tpu.memory_space<vmem>>, vector<1x128x128xf32>,
      %c0_16 = arith.constant 0 : index
      %c0_17 = arith.constant 0 : index
      %c0_18 = arith.constant 0 : index
      %28 = vector.load %arg5[%c0_16, %c0_17, %c0_18] : memref<1x128x128xf32, #tpu.memory_space<vmem>>, vector<1x128x128xf32>
      %29 = vector.shape_cast %23 : vector<128x128xf32> to vector<1x128x128xf32>
      %30 = arith.addf %28, %29 : vector<1x128x128xf32>
      %c0_19 = arith.constant 0 : index
      %c0_20 = arith.constant 0 : index
      %c0_21 = arith.constant 0 : index
      %31 = vector.load %arg5[%c0_19, %c0_20, %c0_21] : memref<1x128x128xf32, #tpu.memory_space<vmem>>, vector<1x128x128xf32>
      tpu.vector_store %arg5[%c0_19, %c0_20, %c0_21], %30 {strides = array<i32>} : memref<1x128x128xf32, #tpu.memory_space<vmem>>, vector<1x128x128xf32>,
    } else {
    }
    %c0_i32_6 = arith.constant 0 : i32
    %15 = arith.cmpi sge, %11, %c0_i32_6 : i32
    %16 = arith.extui %15 : i1 to i32
    %c0_i32_7 = arith.constant 0 : i32
    %17 = arith.cmpi ne, %16, %c0_i32_7 : i32
    scf.if %17 {
      %18 = tpu.iota {dimensions = array<i32: 0>} : vector<128x128xi32>
      %c128_i32 = arith.constant 128 : i32
      %19 = arith.muli %11, %c128_i32 : i32
      %20 = vector.broadcast %19 : i32 to vector<128x128xi32>
      %21 = arith.addi %20, %18 : vector<128x128xi32>
      %c16_i32 = arith.constant 16 : i32
      %22 = vector.broadcast %c16_i32 : i32 to vector<128x128xi32>
      %23 = arith.cmpi slt, %21, %22 : vector<128x128xi32>
      %cst_8 = arith.constant 0.000000e+00 : f32
      %24 = vector.broadcast %cst_8 : f32 to vector<128x128xf32>
      %25 = arith.select %23, %8, %24 : vector<128x128xi1>, vector<128x128xf32>
      %cst_9 = arith.constant 0.000000e+00 : f32
      %26 = vector.broadcast %cst_9 : f32 to vector<128x128xf32>
      %27 = arith.select %23, %9, %26 : vector<128x128xi1>, vector<128x128xf32>
      %28 = arith.mulf %25, %27 : vector<128x128xf32>
      %29 = vector.shape_cast %28 : vector<128x128xf32> to vector<1x128x128xf32>
      %cst_10 = arith.constant dense<0.000000e+00> : vector<128x128xf32>
      %30 = vector.multi_reduction <add>, %29, %cst_10 [0] : vector<1x128x128xf32> to vector<128x128xf32>
      %31 = arith.addf %25, %27 : vector<128x128xf32>
      %32 = vector.shape_cast %31 : vector<128x128xf32> to vector<1x128x128xf32>
      %cst_11 = arith.constant dense<0.000000e+00> : vector<128x128xf32>
      %33 = vector.multi_reduction <add>, %32, %cst_11 [0] : vector<1x128x128xf32> to vector<128x128xf32>
      %c0_12 = arith.constant 0 : index
      %c0_13 = arith.constant 0 : index
      %c0_14 = arith.constant 0 : index
      %34 = vector.load %arg4[%c0_12, %c0_13, %c0_14] : memref<1x128x128xf32, #tpu.memory_space<vmem>>, vector<1x128x128xf32>
      %35 = vector.shape_cast %30 : vector<128x128xf32> to vector<1x128x128xf32>
      %36 = arith.addf %34, %35 : vector<1x128x128xf32>
      %c0_15 = arith.constant 0 : index
      %c0_16 = arith.constant 0 : index
      %c0_17 = arith.constant 0 : index
      %37 = vector.load %arg4[%c0_15, %c0_16, %c0_17] : memref<1x128x128xf32, #tpu.memory_space<vmem>>, vector<1x128x128xf32>
      tpu.vector_store %arg4[%c0_15, %c0_16, %c0_17], %36 {strides = array<i32>} : memref<1x128x128xf32, #tpu.memory_space<vmem>>, vector<1x128x128xf32>,
      %c0_18 = arith.constant 0 : index
      %c0_19 = arith.constant 0 : index
      %c0_20 = arith.constant 0 : index
      %38 = vector.load %arg5[%c0_18, %c0_19, %c0_20] : memref<1x128x128xf32, #tpu.memory_space<vmem>>, vector<1x128x128xf32>
      %39 = vector.shape_cast %33 : vector<128x128xf32> to vector<1x128x128xf32>
      %40 = arith.addf %38, %39 : vector<1x128x128xf32>
      %c0_21 = arith.constant 0 : index
      %c0_22 = arith.constant 0 : index
      %c0_23 = arith.constant 0 : index
      %41 = vector.load %arg5[%c0_21, %c0_22, %c0_23] : memref<1x128x128xf32, #tpu.memory_space<vmem>>, vector<1x128x128xf32>
      tpu.vector_store %arg5[%c0_21, %c0_22, %c0_23], %40 {strides = array<i32>} : memref<1x128x128xf32, #tpu.memory_space<vmem>>, vector<1x128x128xf32>,
    } else {
    }
    return
  }
  func.func @transform_0(%arg0: i32, %arg1: i32) -> (i32, i32) {
    %c1_i32 = arith.constant 1 : i32
    %0 = arith.muli %arg0, %c1_i32 : i32
    %1 = arith.addi %0, %arg1 : i32
    %c0_i32 = arith.constant 0 : i32
    %2 = arith.minsi %1, %c0_i32 : i32
    %c0_i32_0 = arith.constant 0 : i32
    %c0_i32_1 = arith.constant 0 : i32
    return %2, %c0_i32_0 : i32, i32
  }
  func.func @transform_1(%arg0: i32, %arg1: i32) -> (i32, i32) {
    %c1_i32 = arith.constant 1 : i32
    %0 = arith.muli %arg0, %c1_i32 : i32
    %1 = arith.addi %0, %arg1 : i32
    %c0_i32 = arith.constant 0 : i32
    %2 = arith.minsi %1, %c0_i32 : i32
    %c0_i32_0 = arith.constant 0 : i32
    %c0_i32_1 = arith.constant 0 : i32
    return %2, %c0_i32_0 : i32, i32
  }
  func.func @transform_2(%arg0: i32, %arg1: i32) -> (i32, i32, i32) {
    %c0_i32 = arith.constant 0 : i32
    %c0_i32_0 = arith.constant 0 : i32
    %c0_i32_1 = arith.constant 0 : i32
    return %arg0, %c0_i32, %c0_i32_0 : i32, i32, i32
  }
  func.func @transform_3(%arg0: i32, %arg1: i32) -> (i32, i32, i32) {
    %c0_i32 = arith.constant 0 : i32
    %c0_i32_0 = arith.constant 0 : i32
    %c0_i32_1 = arith.constant 0 : i32
    return %arg0, %c0_i32, %c0_i32_0 : i32, i32, i32
  }
}

</mosaic_0001>

<bundles_post_ra>
// kernel: tpu_custom_call.1
= control target key start
LH: loop header
LB: loop body
LE: loop exit
PB: predicated region body
PF: predicated region fallthrough
CT: control target
= control target key end

     0   :  { %s2765_s0 = inlined_call_operand.hbm [shape: f32[16,128], index: 0, kind: input, shape index: {}]   ;;  %s2766_s1 = inlined_call_operand.hbm [shape: f32[16,128], index: 1, kind: input, shape index: {}]   ;;  %s2767_s2 = inlined_call_operand.hbm [shape: f32[2,128,128], index: 2, kind: output, shape index: {0}]   ;;  %s2768_s3 = inlined_call_operand.hbm [shape: f32[2,128,128], index: 3, kind: output, shape index: {1}]  }
   0x1   :  { %2769 = sst [smem:[#allocation14_spill]] %s2765_s0 }
   0x2   :  { %9 = vsyncpa [#allocation3], 0 }
   0x3   :  { %11 = vsyncpa [#allocation3 + $0x1], 0 }
   0x4   :  { %12 = vsyncpa [#allocation6], 0 }
   0x5   :  { %14 = vsyncpa [#allocation6 + $0x1], 0 }
   0x6   :  { %15 = vsyncpa [#allocation4], 0 }
   0x7   :  { %17 = vsyncpa [#allocation4 + $0x1], 0 }
   0x8   :  { %18 = vsyncpa [#allocation9], 0 }
   0x9   :  { %20 = vsyncpa [#allocation9 + $0x1], 0  ;;  %s1718_s12 = smov 0   ;;  %s1720_s13 = smov 0  }
   0xa   :  { %s1722_s14 = smov 0   ;;  %s1724_s15 = smov 0  }
   0xb   :  { %s1726_s16 = smov 0   ;;  %s1728_s17 = smov 0  }
   0xc   :  { %s1730_s18 = smov 0   ;;  %s1732_s19 = smov 0  }
   0xd LB: > { %s1255_s20 = sadd.s32 4294967295, %s1687_s19   ;;  %s1256_s21 = sadd.s32 4294967294, %s1687_s19   ;;  %s1687_s19 = sphi %s1732_s19, %s26_s19   ;;  %s1683_s18 = sphi %s1730_s18, %s2841_s18   ;;  %s1679_s17 = sphi %s1728_s17, %s2840_s17   ;;  %s1675_s16 = sphi %s1726_s16, %s2755_s16   ;;  %s1671_s15 = sphi %s1724_s15, %s2839_s15   ;;  %s1667_s14 = sphi %s1722_s14, %s2838_s14   ;;  %s1663_s13 = sphi %s1720_s13, %s2837_s13   ;;  %s1659_s12 = sphi %s1718_s12, %s2836_s12  }
   0xe   : > { %s38_s22 = sadd.s32 1, %s1683_s18  ;;  %p1656_p1 = scmp.ne.s32.totalorder %s1675_s16, 0 }
   0xf   : > { %p40_p0 = scmp.ge.s32.totalorder %s38_s22, 2  ;;  %p59_p2 = scmp.eq.s32.totalorder %s1687_s19, 0 }
  0x10   : > { %p64_p3 = scmp.ne.s32.totalorder %s1675_s16, %s1671_s15  ;;  %p65_p5 = scmp.eq.s32.totalorder %s1255_s20, 0 }
  0x11   : > { %s2843_s22 = smov (%p40_p0, %s38_s22), 0  ;;  %p1764_p4 = por %p1656_p1, %p59_p2 }
  0x12   : > { %p1768_p6 = por %p65_p5, %p64_p3  ;;  %s106_s25 = ssub.s32 %s1683_s18, %s2843_s22 }
  0x13   : > { %p107_p7 = scmp.eq.s32.totalorder %s106_s25, 0  ;;  %s109_s26 = sadd.s32 1, %s1667_s14 }
  0x14   : > { %p119_p8 = scmp.ne.s32.totalorder %s1667_s14, %s1663_s13  ;;  %p120_p9 = scmp.eq.s32.totalorder %s1255_s20, 1 }
  0x15   : > { %s1776_s27 = scalar_select %p107_p7, %s1667_s14, %s109_s26  }
  0x16   : > { %p125_p10 = scmp.ne.s32.totalorder %s1663_s13, %s1659_s12  ;;  %p126_p11 = scmp.eq.s32.totalorder %s1256_s21, 1 }
  0x17   : > { %p1782_p12 = por %p120_p9, %p119_p8  ;;  %p1258_p0 = scmp.ge.s32.totalorder %s1687_s19, 2 }
  0x18   : > { %p1786_p13 = por %p126_p11, %p125_p10 }
  0x19   : > { %168 = sbr.rel (%p1258_p0) target bundleno = 80 (0x50), region = 16 }
  0x1e   : > { %171 = sbr.rel (!%p1764_p4) target bundleno = 58 (0x3a), region = 20 }
  0x23   : > { %185 = vsyncadd [#allocation3], 1792  ;;  %s1689_s30 = smov [#allocation2]   ;;  %s2774_s0 = sld [smem:[#allocation14_spill]] }
  0x24   : > { %s192_s4 = sshll.u32 %s1689_s30, 4  ;;  %s193_s4 = int_to_ptr.vmem [resolvable:$true] %s192_s4 }
  0x29   : > { %s190_s7 = sshll.u32 %s2774_s0, 4  ;;  %s1477_s15 = scalar_lea.hbm %s2774_s0, 16  ;;  %s191_s7 = int_to_ptr.hbm [resolvable:$true] %s190_s7 }
  0x2a   : > { %s1466_s8 = sshra.s32 %s191_s7, 4  ;;  %s1467_s8 = int_to_ptr.hbm [resolvable:$true] %s1466_s8 }
  0x2b   : > { %s1473_s9 = scalar_lea.hbm %s1467_s8, 16 }
  0x2c   : > { %p1474_p1 = scmp.ne.s32.totalorder %s1467_s8, %s1473_s9  ;;  %p1479_p2 = scmp.lt.s32.totalorder %s1477_s15, %s1473_s9 }
  0x2e   : > { %p1481_p3 = pnand %p1479_p2, %p1474_p1 }
  0x30   : > { %1484 = shalt.err (!%p1481_p3)
}
  0x31   : > { %s1485_s20 = sshra.s32 %s193_s4, 4  ;;  %s1496_s25 = scalar_lea.vmem %s1689_s30, 256  ;;  %s1486_s20 = int_to_ptr.vmem [resolvable:$true] %s1485_s20 }
  0x32   : > { %s1492_s21 = scalar_lea.vmem %s1486_s20, 16 }
  0x33   : > { %p1493_p5 = scmp.ne.s32.totalorder %s1486_s20, %s1492_s21  ;;  %p1498_p7 = scmp.lt.s32.totalorder %s1496_s25, %s1492_s21 }
  0x35   : > { %p1500_p8 = pnand %p1498_p7, %p1493_p5 }
  0x37   : > { %1503 = shalt.err (!%p1500_p8)
}
  0x38   : > { %s1690_s26 = smov 128   ;;  %s1691_s5 = smov 8  }
  0x39   : > { %198 = dma.hbm_to_vmem [thread:$0]  %s191_s7, 256, %s193_s4, [#allocation3], %s1690_s26, %s1690_s26, %s1691_s5  }
  0x3a PF: > { %201 = sbr.rel (!%p1764_p4) target bundleno = 80 (0x50), region = 24 }
  0x3f   : > { %215 = vsyncadd [#allocation6], 1792  ;;  %s1692_s6 = smov [#allocation5]   ;;  %s220_s11 = sshll.u32 %s2766_s1, 4  ;;  %s221_s11 = int_to_ptr.hbm [resolvable:$true] %s220_s11 }
  0x40   : > { %s222_s8 = sshll.u32 %s1692_s6, 4  ;;  %s1505_s30 = sshra.s32 %s221_s11, 4  ;;  %s223_s8 = int_to_ptr.vmem [resolvable:$true] %s222_s8  ;;  %s1506_s30 = int_to_ptr.hbm [resolvable:$true] %s1505_s30 }
  0x41   : > { %s1512_s15 = scalar_lea.hbm %s1506_s30, 16  ;;  %s1516_s4 = scalar_lea.hbm %s2766_s1, 16 }
  0x42   : > { %p1513_p9 = scmp.ne.s32.totalorder %s1506_s30, %s1512_s15  ;;  %p1518_p10 = scmp.lt.s32.totalorder %s1516_s4, %s1512_s15 }
  0x44   : > { %p1520_p11 = pnand %p1518_p10, %p1513_p9 }
  0x46   : > { %1523 = shalt.err (!%p1520_p11)
}
  0x47   : > { %s1524_s23 = sshra.s32 %s223_s8, 4  ;;  %s1535_s25 = scalar_lea.vmem %s1692_s6, 256  ;;  %s1525_s23 = int_to_ptr.vmem [resolvable:$true] %s1524_s23 }
  0x48   : > { %s1531_s7 = scalar_lea.vmem %s1525_s23, 16 }
  0x49   : > { %p1532_p4 = scmp.ne.s32.totalorder %s1525_s23, %s1531_s7  ;;  %p1537_p1 = scmp.lt.s32.totalorder %s1535_s25, %s1531_s7 }
  0x4b   : > { %p1539_p2 = pnand %p1537_p1, %p1532_p4 }
  0x4d   : > { %1542 = shalt.err (!%p1539_p2)
}
  0x4e   : > { %s1693_s26 = smov 128   ;;  %s1694_s5 = smov 8  }
  0x4f   : > { %228 = dma.hbm_to_vmem [thread:$0]  %s221_s11, 256, %s223_s8, [#allocation6], %s1693_s26, %s1693_s26, %s1694_s5  }
  0x50 PF: > { %p1273_p3 = scmp.ge.s32.totalorder %s1687_s19, 1  ;;  %p230_p5 = scmp.lt.s32.totalorder %s1687_s19, 3 }
  0x52   : > { %p231_p7 = pnand %p1273_p3, %p230_p5 }
  0x53   : > { %s236_s9 = sand.u32 (!%p231_p7), 1, %s1675_s16  }
  0x54   : > { %234 = sbr.rel (%p231_p7) target bundleno = 312 (0x138), region = 28  ;;  %s1274_s10 = sshll.u32 (!%p231_p7), %s236_s9, 7 }
  0x55   : > { %s237_s30 = scalar_lea.sflag (!%p231_p7), [#allocation3], %s236_s9  ;;  %s1812_s6 = scalar_lea.vmem (!%p231_p7), [#allocation2], %s1274_s10 }
  0x59   : > { %1637 = dma.done.wait (%p1768_p6), %s237_s30, 2048  }
  0x5a   : > { %1639 = vsyncadd (%p1768_p6), %s237_s30, 4294965248  ;;  %s247_s8 = scalar_lea.sflag [#allocation6], %s236_s9  ;;  %s1818_s11 = scalar_lea.vmem [#allocation5], %s1274_s10 }
  0x5b   : > { %1641 = dma.done.wait (%p1768_p6), %s247_s8, 2048  }
  0x5c   : > { %1643 = vsyncadd (%p1768_p6), %s247_s8, 4294965248  ;;  %v332_v0 = vld [vmem:[%s1812_s6] sm:$0xff]  ;;  %v333_v1 = vld [vmem:[%s1812_s6 + $0x8] sm:$0xff]  ;;  %s2226_s24 = sand.u32 1, %s1663_s13   ;;  %p1294_p6 = scmp.ge.s32.totalorder %s1679_s17, 0 }
  0x5d   : > { %v334_v2 = vld [vmem:[%s1812_s6 + $0x10] sm:$0xff]  ;;  %v335_v3 = vld [vmem:[%s1812_s6 + $0x18] sm:$0xff]  ;;  %v1278_v4 = vmul.f32 -1.442695, %v332_v0  ;;  %v336_v5 = vld [vmem:[%s1812_s6 + $0x20] sm:$0xff]  ;;  %s1276_s15 = sshll.u32 %s2226_s24, 7 }
  0x5e   : > { %v337_v6 = vld [vmem:[%s1812_s6 + $0x28] sm:$0xff]  ;;  %v1279_v7 = vmul.f32 -1.442695, %v333_v1  ;;  %v338_v8 = vld [vmem:[%s1812_s6 + $0x30] sm:$0xff]  ;;  %v339_v9 = vld [vmem:[%s1812_s6 + $0x38] sm:$0xff]  ;;  %s2280_s20 = scalar_lea.vmem [#allocation7], %s1276_s15 }
  0x5f   : > { %1402 = vpow2.f32 %v1278_v4  ;;  %v1280_v10 = vmul.f32 -1.442695, %v334_v2  ;;  %v340_v11 = vld [vmem:[%s1812_s6 + $0x40] sm:$0xff]  ;;  %v1281_v12 = vmul.f32 -1.442695, %v335_v3  ;;  %v341_v13 = vld [vmem:[%s1812_s6 + $0x48] sm:$0xff] }
  0x60   : > { %1404 = vpow2.f32 %v1279_v7  ;;  %v1282_v14 = vmul.f32 -1.442695, %v336_v5  ;;  %v1283_v15 = vmul.f32 -1.442695, %v337_v6  ;;  %v342_v16 = vld [vmem:[%s1812_s6 + $0x50] sm:$0xff]  ;;  %v343_v19 = vld [vmem:[%s1812_s6 + $0x58] sm:$0xff] }
  0x61   : > { %1406 = vpow2.f32 %v1280_v10  ;;  %v1284_v17 = vmul.f32 -1.442695, %v338_v8  ;;  %v1285_v18 = vmul.f32 -1.442695, %v339_v9  ;;  %v1286_v20 = vmul.f32 -1.442695, %v340_v11 }
  0x62   : > { %1408 = vpow2.f32 %v1281_v12  ;;  %v344_v21 = vld [vmem:[%s1812_s6 + $0x60] sm:$0xff]  ;;  %v1287_v22 = vmul.f32 -1.442695, %v341_v13  ;;  %v345_v24 = vld [vmem:[%s1812_s6 + $0x68] sm:$0xff]  ;;  %v1288_v25 = vmul.f32 -1.442695, %v342_v16 }
  0x63   : > { %1410 = vpow2.f32 %v1282_v14  ;;  %v346_v27 = vld [vmem:[%s1812_s6 + $0x70] sm:$0xff]  ;;  %v1289_v28 = vmul.f32 -1.442695, %v343_v19  ;;  %v347_v30 = vld [vmem:[%s1812_s6 + $0x78] sm:$0xff]  ;;  %v1290_v31 = vmul.f32 -1.442695, %v344_v21 }
  0x64   : > { %1412 = vpow2.f32 %v1283_v15  ;;  %v1291_v33 = vmul.f32 -1.442695, %v345_v24  ;;  %v1292_v35 = vmul.f32 -1.442695, %v346_v27  ;;  %v1293_v37 = vmul.f32 -1.442695, %v347_v30 }
  0x65   : > { %v1403_v23 = vpop.eup %1402  ;;  %1414 = vpow2.f32 %v1284_v17  ;;  %s2321_s21 = scalar_lea.vmem [#allocation8], %s1276_s15 }
  0x66   : > { %v1405_v26 = vpop.eup %1404  ;;  %1416 = vpow2.f32 %v1285_v18  ;;  %v1840_v38 = vadd.f32 1.0, %v1403_v23 }
  0x67   : > { %v1407_v29 = vpop.eup %1406  ;;  %1418 = vpow2.f32 %v1286_v20  ;;  %v1842_v40 = vadd.f32 1.0, %v1405_v26 }
  0x68   : > { %v1409_v32 = vpop.eup %1408  ;;  %1420 = vpow2.f32 %v1287_v22  ;;  %v423_v42 = vand.u32 2147483648, %v1840_v38  ;;  %v1845_v44 = vadd.f32 1.0, %v1407_v29  ;;  %v421_v48 = vand.u32 2147483647, %v1840_v38 }
  0x69   : > { %v1411_v34 = vpop.eup %1410  ;;  %1422 = vpow2.f32 %v1288_v25  ;;  %v438_v45 = vand.u32 2147483648, %v1842_v40  ;;  %v1848_v47 = vadd.f32 1.0, %v1409_v32  ;;  %v436_v52 = vand.u32 2147483647, %v1842_v40 }
  0x6a   : > { %v1413_v36 = vpop.eup %1412  ;;  %1424 = vpow2.f32 %v1289_v28  ;;  %v1851_v50 = vadd.f32 1.0, %v1411_v34  ;;  %vm417_vm0 = vweird.f32 %v1840_v38  ;;  %v1862_v55 = vor.u32 1.1754944e-38, %v423_v42 }
  0x6b   : > { %v1415_v39 = vpop.eup %1414  ;;  %1426 = vpow2.f32 %v1290_v31  ;;  %v1853_v51 = vadd.f32 1.0, %v1413_v36  ;;  %v453_v56 = vand.u32 2147483648, %v1845_v44  ;;  %vm432_vm1 = vweird.f32 %v1842_v40 }
  0x6c   : > { %v1417_v41 = vpop.eup %1416  ;;  %1428 = vpow2.f32 %v1291_v33  ;;  %v1859_v54 = vadd.f32 1.0, %v1415_v39  ;;  %v1871_v59 = vor.u32 1.1754944e-38, %v438_v45  ;;  %v468_v60 = vand.u32 2147483648, %v1848_v47 }
  0x6d   : > { %v1419_v43 = vpop.eup %1418  ;;  %1430 = vpow2.f32 %v1292_v35  ;;  %v1868_v58 = vadd.f32 1.0, %v1417_v41  ;;  %vm447_vm2 = vweird.f32 %v1845_v44  ;;  %v451_v0 = vand.u32 2147483647, %v1845_v44 }
  0x6e   : > { %v1421_v46 = vpop.eup %1420  ;;  %1432 = vpow2.f32 %v1293_v37  ;;  %v1877_v62 = vadd.f32 1.0, %v1419_v43  ;;  %v466_v3 = vand.u32 2147483647, %v1848_v47  ;;  %v483_v4 = vand.u32 2147483648, %v1851_v50 }
  0x6f   : > { %v1423_v49 = vpop.eup %1422  ;;  %1434 = vrcp.f32 %v1840_v38  ;;  %v1879_v63 = vadd.f32 1.0, %v1421_v46  ;;  %vm1894_vm4 = vcmp.eq.f32.partialorder %v421_v48, 8.507059e+37  ;;  %v1898_v7 = vor.u32 1.1754944e-38, %v453_v56 }
  0x70   : > { %v1857_v53 = vpop.eup %1424  ;;  %1436 = vrcp.f32 %v1842_v40  ;;  %v1886_v2 = vadd.f32 1.0, %v1423_v49  ;;  %v481_v8 = vand.u32 2147483647, %v1851_v50  ;;  %vm1903_vm6 = vcmp.eq.f32.partialorder %v436_v52, 8.507059e+37 }
  0x71   : > { %v1866_v57 = vpop.eup %1426  ;;  %1438 = vrcp.f32 %v1845_v44  ;;  %v1907_v11 = vor.u32 1.1754944e-38, %v468_v60  ;;  %v496_v12 = vand.u32 2147483647, %v1853_v51  ;;  %v498_v13 = vand.u32 2147483648, %v1853_v51 }
  0x72   : > { %v1875_v61 = vpop.eup %1428  ;;  %1440 = vrcp.f32 %v1848_v47  ;;  %vm1913_vm8 = vcmp.eq.f32.partialorder %v451_v0, 8.507059e+37  ;;  %v1917_v17 = vor.u32 1.1754944e-38, %v483_v4  ;;  %vm1921_vm11 = vcmp.eq.f32.partialorder %v466_v3, 8.507059e+37 }
  0x73   : > { %v1884_v1 = vpop.eup %1430  ;;  %1442 = vrcp.f32 %v1851_v50  ;;  %v511_v21 = vand.u32 2147483647, %v1859_v54  ;;  %vm1928_vm14 = vcmp.eq.f32.partialorder %v481_v8, 8.507059e+37  ;;  %v499_v26 = vor.u32 1.1754944e-38, %v498_v13 }
  0x74   : > { %v1892_v5 = vpop.eup %1432  ;;  %1444 = vrcp.f32 %v1853_v51  ;;  %vm1933_vm9 = vcmp.eq.f32.partialorder %v496_v12, 8.507059e+37  ;;  %v513_v31 = vand.u32 2147483648, %v1859_v54  ;;  %v528_v25 = vand.u32 2147483648, %v1868_v58 }
  0x75   : > { %v1435_v9 = vpop.eup %1434  ;;  %1446 = vrcp.f32 %v1859_v54  ;;  %vm1939_vm5 = vcmp.eq.f32.partialorder %v511_v21, 8.507059e+37  ;;  %v543_v30 = vand.u32 2147483648, %v1877_v62 }
  0x76   : > { %v1437_v14 = vpop.eup %1436  ;;  %v413_v15 = vmul.f32 %v1435_v9, %v1840_v38  ;;  %vm418_vm7 = vweird.f32 %v1435_v9  ;;  %1448 = vrcp.f32 %v1868_v58 }
  0x77   : > { %v1439_v18 = vpop.eup %1438  ;;  %v428_v19 = vmul.f32 %v1437_v14, %v1842_v40  ;;  %vm433_vm10 = vweird.f32 %v1437_v14  ;;  %vm1946_vm3 = vmor %vm417_vm0, %vm418_vm7  ;;  %1450 = vrcp.f32 %v1877_v62  ;;  %v2086_v39 = vor.u32 1.1754944e-38, %v543_v30  ;;  %v2183_v30 = vld [vmem:[%s1818_s11 + $0x78] sm:$0xff] }
  0x78   : > { %v1441_v22 = vpop.eup %1440  ;;  %v414_v23 = vsub.f32 1.0, %v413_v15  ;;  %v443_v24 = vmul.f32 %v1439_v18, %v1845_v44  ;;  %vm448_vm13 = vweird.f32 %v1439_v18  ;;  %vm1954_vm12 = vmor %vm432_vm1, %vm433_vm10  ;;  %vm2796_vm10 = vweird.f32 %v1848_v47 }
  0x79   : > { %v1443_v27 = vpop.eup %1442  ;;  %v429_v28 = vsub.f32 1.0, %v428_v19  ;;  %v458_v29 = vmul.f32 %v1441_v22, %v1848_v47  ;;  %vm1962_vm0 = vmor %vm447_vm2, %vm448_vm13  ;;  %vm2795_vm1 = vweird.f32 %v1441_v22  ;;  %1452 = vrcp.f32 %v1879_v63  ;;  %v2137_v47 = vld [vmem:[%s1818_s11 + $0x40] sm:$0xff] }
  0x7a   : > { %v1445_v32 = vpop.eup %1444  ;;  %v415_v33 = vmul.f32 %v1435_v9, %v414_v23  ;;  %v444_v34 = vsub.f32 1.0, %v443_v24  ;;  %v473_v35 = vmul.f32 %v1443_v27, %v1851_v50  ;;  %vm1971_vm15 = vmor %vm2796_vm10, %vm2795_vm1  ;;  %vm2799_vm2 = vweird.f32 %v1443_v27 }
  0x7b   : > { %v1447_v37 = vpop.eup %1446  ;;  %v430_v41 = vmul.f32 %v1437_v14, %v429_v28  ;;  %v459_v42 = vsub.f32 1.0, %v458_v29  ;;  %v488_v43 = vmul.f32 %v1445_v32, %v1853_v51  ;;  %v541_v28 = vand.u32 2147483647, %v1877_v62 }
  0x7c   : > { %v416_v45 = vadd.f32 %v1435_v9, %v415_v33  ;;  %v445_v48 = vmul.f32 %v1439_v18, %v444_v34  ;;  %v474_v49 = vsub.f32 1.0, %v473_v35  ;;  %v503_v38 = vmul.f32 %v1447_v37, %v1859_v54 }
  0x7d   : > { %v431_v52 = vadd.f32 %v1437_v14, %v430_v41  ;;  %v460_v60 = vmul.f32 %v1441_v22, %v459_v42  ;;  %v489_v0 = vsub.f32 1.0, %v488_v43  ;;  %vm508_vm7 = vweird.f32 %v1447_v37  ;;  %v2091_v41 = vld [vmem:[%s1818_s11] sm:$0xff]  ;;  %v2094_v42 = vld [vmem:[%s1818_s11 + $0x8] sm:$0xff] }
  0x7e   : > { %v420_v40 = vsel %vm1946_vm3, %v1435_v9, %v416_v45  ;;  %v446_v3 = vadd.f32 %v1439_v18, %v445_v48  ;;  %v475_v8 = vmul.f32 %v1443_v27, %v474_v49  ;;  %v504_v44 = vsub.f32 1.0, %v503_v38  ;;  %v2105_v49 = vld [vmem:[%s1818_s11 + $0x10] sm:$0xff]  ;;  %v2108_v38 = vld [vmem:[%s1818_s11 + $0x18] sm:$0xff] }
  0x7f   : > { %v1978_v12 = vsel %vm1894_vm4, %v1862_v55, %v420_v40  ;;  %v435_v13 = vsel %vm1954_vm12, %v1437_v14, %v431_v52  ;;  %v461_v15 = vadd.f32 %v1441_v22, %v460_v60  ;;  %vm2800_vm3 = vweird.f32 %v1851_v50  ;;  %v2111_v52 = vld [vmem:[%s1818_s11 + $0x20] sm:$0xff]  ;;  %v2124_v40 = vld [vmem:[%s1818_s11 + $0x28] sm:$0xff] }
  0x80   : > { %vm1985_vm13 = vmor %vm2800_vm3, %vm2799_vm2  ;;  %v490_v9 = vmul.f32 %v1445_v32, %v489_v0  ;;  %v1992_v19 = vsel %vm1903_vm6, %v1871_v59, %v435_v13  ;;  %v450_v55 = vsel %vm1962_vm0, %v1439_v18, %v446_v3  ;;  %v476_v6 = vadd.f32 %v1443_v27, %v475_v8  ;;  %v2127_v3 = vld [vmem:[%s1818_s11 + $0x30] sm:$0xff] }
  0x81   : > { %vm2803_vm4 = vweird.f32 %v1445_v32  ;;  %vm2804_vm12 = vweird.f32 %v1853_v51  ;;  %v505_v50 = vmul.f32 %v1447_v37, %v504_v44  ;;  %v2006_v21 = vsel %vm1913_vm8, %v1898_v7, %v450_v55 }
  0x82   : > { %vm1999_vm1 = vmor %vm2804_vm12, %vm2803_vm4  ;;  %v465_v59 = vsel %vm1971_vm15, %v1441_v22, %v461_v15  ;;  %v491_v10 = vadd.f32 %v1445_v32, %v490_v9  ;;  %vm2807_vm6 = vweird.f32 %v1859_v54  ;;  %v514_v51 = vor.u32 1.1754944e-38, %v513_v31  ;;  %v2134_v15 = vld [vmem:[%s1818_s11 + $0x38] sm:$0xff]  ;;  %v2140_v9 = vld [vmem:[%s1818_s11 + $0x48] sm:$0xff] }
  0x83   : > { %vm2013_vm0 = vmor %vm2807_vm6, %vm508_vm7  ;;  %v2020_v23 = vsel %vm1921_vm11, %v1907_v11, %v465_v59  ;;  %v480_v7 = vsel %vm1985_vm13, %v1443_v27, %v476_v6  ;;  %v506_v16 = vadd.f32 %v1447_v37, %v505_v50  ;;  %v2026_v22 = vadd.f32 1.0, %v1857_v53  ;;  %v2155_v59 = vld [vmem:[%s1818_s11 + $0x50] sm:$0xff] }
  0x84   : > { %v2029_v54 = vadd.f32 1.0, %v1866_v57  ;;  %v2034_v24 = vsel %vm1928_vm14, %v1917_v17, %v480_v7  ;;  %v495_v11 = vsel %vm1999_vm1, %v1445_v32, %v491_v10  ;;  %v526_v53 = vand.u32 2147483647, %v1868_v58  ;;  %v2067_v32 = vpop.eup %1448  ;;  %v2158_v10 = vld [vmem:[%s1818_s11 + $0x58] sm:$0xff]  ;;  %v2164_v7 = vld [vmem:[%s1818_s11 + $0x60] sm:$0xff] }
  0x85   : > { %v2040_v20 = vsel %vm1933_vm9, %v499_v26, %v495_v11  ;;  %v510_v27 = vsel %vm2013_vm0, %v1447_v37, %v506_v16  ;;  %v2047_v57 = vadd.f32 1.0, %v1875_v61  ;;  %v2056_v26 = vadd.f32 1.0, %v1884_v1  ;;  %v2083_v37 = vpop.eup %1450  ;;  %v2167_v16 = vld [vmem:[%s1818_s11 + $0x68] sm:$0xff] }
  0x86   : > { %v2051_v17 = vsel %vm1939_vm5, %v514_v51, %v510_v27  ;;  %v2059_v29 = vadd.f32 1.0, %v1892_v5  ;;  %vm522_vm8 = vweird.f32 %v1868_v58  ;;  %v556_v61 = vand.u32 2147483647, %v1879_v63  ;;  %v2113_v56 = vpop.eup %1452 }
  0x87   : > { %v558_v31 = vand.u32 2147483648, %v1879_v63  ;;  %1454 = vrcp.f32 %v1886_v2  ;;  %vm2069_vm5 = vcmp.eq.f32.partialorder %v526_v53, 8.507059e+37  ;;  %vm537_vm9 = vweird.f32 %v1877_v62 }
  0x88   : > { %v571_v5 = vand.u32 2147483647, %v1886_v2  ;;  %v573_v33 = vand.u32 2147483648, %v1886_v2  ;;  %v518_v34 = vmul.f32 %v2067_v32, %v1868_v58  ;;  %v529_v35 = vor.u32 1.1754944e-38, %v528_v25 }
  0x89   : > { %vm2078_vm11 = vcmp.eq.f32.partialorder %v541_v28, 8.507059e+37  ;;  %vm552_vm14 = vweird.f32 %v1879_v63  ;;  %vm523_vm15 = vweird.f32 %v2067_v32  ;;  %vm567_vm7 = vweird.f32 %v1886_v2  ;;  %v2180_v28 = vld [vmem:[%s1818_s11 + $0x70] sm:$0xff] }
  0x8a   : > { %1456 = vrcp.f32 %v2026_v22  ;;  %v519_v43 = vsub.f32 1.0, %v518_v34  ;;  %v533_v45 = vmul.f32 %v2083_v37, %v1877_v62  ;;  %vm2098_vm10 = vcmp.eq.f32.partialorder %v556_v61, 8.507059e+37  ;;  %vm2146_vm4 = vmor %vm522_vm8, %vm523_vm15 }
  0x8b   : > { %v2102_v48 = vor.u32 1.1754944e-38, %v558_v31  ;;  %vm2115_vm2 = vcmp.eq.f32.partialorder %v571_v5, 8.507059e+37  ;;  %v2119_v0 = vor.u32 1.1754944e-38, %v573_v33  ;;  %vm582_vm3 = vweird.f32 %v2026_v22 }
  0x8c   : > { %1458 = vrcp.f32 %v2029_v54  ;;  %v520_v8 = vmul.f32 %v2067_v32, %v519_v43  ;;  %v534_v44 = vsub.f32 1.0, %v533_v45  ;;  %vm538_vm13 = vweird.f32 %v2083_v37 }
  0x8d   : > { %v1455_v4 = vpop.eup %1454  ;;  %v548_v13 = vmul.f32 %v2113_v56, %v1879_v63  ;;  %v586_v14 = vand.u32 2147483647, %v2026_v22  ;;  %v588_v50 = vand.u32 2147483648, %v2026_v22  ;;  %vm597_vm12 = vweird.f32 %v2029_v54  ;;  %vm2173_vm6 = vmor %vm537_vm9, %vm538_vm13 }
  0x8e   : > { %v563_v6 = vmul.f32 %v1455_v4, %v1886_v2  ;;  %v521_v58 = vadd.f32 %v2067_v32, %v520_v8  ;;  %v535_v18 = vmul.f32 %v2083_v37, %v534_v44  ;;  %vm553_vm1 = vweird.f32 %v2113_v56 }
  0x8f   : > { %v549_v51 = vsub.f32 1.0, %v548_v13  ;;  %vm568_vm0 = vweird.f32 %v1455_v4  ;;  %v601_v25 = vand.u32 2147483647, %v2029_v54  ;;  %1460 = vrcp.f32 %v2047_v57  ;;  %vm2199_vm8 = vmor %vm552_vm14, %vm553_vm1 }
  0x90   : > { %v1457_v11 = vpop.eup %1456  ;;  %v564_v53 = vsub.f32 1.0, %v563_v6  ;;  %v525_v61 = vsel %vm2146_vm4, %v2067_v32, %v521_v58  ;;  %v536_v62 = vadd.f32 %v2083_v37, %v535_v18  ;;  %vm2203_vm15 = vcmp.eq.f32.partialorder %v586_v14, 8.507059e+37 }
  0x91   : > { %v550_v31 = vmul.f32 %v2113_v56, %v549_v51  ;;  %v578_v5 = vmul.f32 %v1457_v11, %v2026_v22  ;;  %v2193_v34 = vsel %vm2069_vm5, %v529_v35, %v525_v61  ;;  %vm583_vm9 = vweird.f32 %v1457_v11  ;;  %vm2214_vm5 = vmor %vm567_vm7, %vm568_vm0 }
  0x92   : > { %v1459_v33 = vpop.eup %1458  ;;  %v565_v32 = vmul.f32 %v1455_v4, %v564_v53  ;;  %v540_v1 = vsel %vm2173_vm6, %v2083_v37, %v536_v62  ;;  %v589_v6 = vor.u32 1.1754944e-38, %v588_v50  ;;  %v603_v37 = vand.u32 2147483648, %v2029_v54 }
  0x93   : > { %v551_v35 = vadd.f32 %v2113_v56, %v550_v31  ;;  %v579_v8 = vsub.f32 1.0, %v578_v5  ;;  %v593_v44 = vmul.f32 %v1459_v33, %v2029_v54  ;;  %v2222_v13 = vsel %vm2078_vm11, %v2086_v39, %v540_v1  ;;  %vm2241_vm11 = vmor %vm582_vm3, %vm583_vm9 }
  0x94   : > { %v566_v55 = vadd.f32 %v1455_v4, %v565_v32  ;;  %vm598_vm14 = vweird.f32 %v1459_v33  ;;  %vm2245_vm7 = vcmp.eq.f32.partialorder %v601_v25, 8.507059e+37  ;;  %1462 = vrcp.f32 %v2056_v26 }
  0x95   : > { %v555_v2 = vsel %vm2199_vm8, %v2113_v56, %v551_v35  ;;  %v580_v14 = vmul.f32 %v1457_v11, %v579_v8  ;;  %v594_v58 = vsub.f32 1.0, %v593_v44  ;;  %v1461_v18 = vpop.eup %1460  ;;  %v604_v22 = vor.u32 1.1754944e-38, %v603_v37 }
  0x96   : > { %v2234_v36 = vsel %vm2098_vm10, %v2102_v48, %v555_v2  ;;  %v570_v39 = vsel %vm2214_vm5, %v1455_v4, %v566_v55  ;;  %v608_v51 = vmul.f32 %v1461_v18, %v2047_v57  ;;  %vm599_vm10 = vmor %vm597_vm12, %vm598_vm14  ;;  %vm612_vm3 = vweird.f32 %v2047_v57 }
  0x97   : > { %v2253_v46 = vsel %vm2115_vm2, %v2119_v0, %v570_v39  ;;  %v581_v48 = vadd.f32 %v1457_v11, %v580_v14  ;;  %v595_v4 = vmul.f32 %v1459_v33, %v594_v58  ;;  %v616_v27 = vand.u32 2147483647, %v2047_v57 }
  0x98   : > { %v618_v53 = vand.u32 2147483648, %v2047_v57  ;;  %v609_v25 = vsub.f32 1.0, %v608_v51  ;;  %vm613_vm2 = vweird.f32 %v1461_v18  ;;  %1464 = vrcp.f32 %v2059_v29 }
  0x99   : > { %v585_v60 = vsel %vm2241_vm11, %v1457_v11, %v581_v48  ;;  %v596_v0 = vadd.f32 %v1459_v33, %v595_v4  ;;  %vm2273_vm13 = vmor %vm612_vm3, %vm613_vm2  ;;  %vm617_vm4 = vcmp.eq.f32.partialorder %v616_v27, 8.507059e+37  ;;  %v631_v45 = vand.u32 2147483647, %v2056_v26 }
  0x9a   : > { %v2266_v61 = vsel %vm2203_vm15, %v589_v6, %v585_v60  ;;  %v610_v62 = vmul.f32 %v1461_v18, %v609_v25  ;;  %v1463_v31 = vpop.eup %1462  ;;  %v619_v11 = vor.u32 1.1754944e-38, %v618_v53  ;;  %v633_v1 = vand.u32 2147483648, %v2056_v26 }
  0x9b   : > { %v600_v54 = vsel %vm599_vm10, %v1459_v33, %v596_v0  ;;  %v623_v32 = vmul.f32 %v1463_v31, %v2056_v26  ;;  %v1695_v33 = vmov 0.0   ;;  %vm627_vm12 = vweird.f32 %v2056_v26 }
  0x9c   : > { %v2271_v5 = vsel %vm2245_vm7, %v604_v22, %v600_v54  ;;  %v611_v43 = vadd.f32 %v1461_v18, %v610_v62  ;;  %300 = vst [vmem:[%s2280_s20] sm:$0xff] %v1695_v33  ;;  %vm628_vm1 = vweird.f32 %v1463_v31  ;;  %vm632_vm0 = vcmp.eq.f32.partialorder %v631_v45, 8.507059e+37 }
  0x9d   : > { %301 = vst [vmem:[%s2280_s20 + $0x8] sm:$0xff] %v1695_v33  ;;  %v624_v63 = vsub.f32 1.0, %v623_v32  ;;  %vm2295_vm6 = vmor %vm627_vm12, %vm628_vm1  ;;  %v634_v2 = vor.u32 1.1754944e-38, %v633_v1  ;;  %vm642_vm8 = vweird.f32 %v2059_v29  ;;  %v648_v26 = vand.u32 2147483648, %v2059_v29 }
  0x9e   : > { %v615_v35 = vsel %vm2273_vm13, %v1461_v18, %v611_v43  ;;  %302 = vst [vmem:[%s2280_s20 + $0x10] sm:$0xff] %v1695_v33  ;;  %v1465_v8 = vpop.eup %1464  ;;  %v646_v18 = vand.u32 2147483647, %v2059_v29 }
  0x9f   : > { %v2290_v44 = vsel %vm617_vm4, %v619_v11, %v615_v35  ;;  %303 = vst [vmem:[%s2280_s20 + $0x18] sm:$0xff] %v1695_v33  ;;  %v625_v55 = vmul.f32 %v1463_v31, %v624_v63  ;;  %v638_v6 = vmul.f32 %v1465_v8, %v2059_v29  ;;  %vm643_vm9 = vweird.f32 %v1465_v8 }
  0xa0   : > { %304 = vst [vmem:[%s2280_s20 + $0x20] sm:$0xff] %v1695_v33  ;;  %vm644_vm15 = vmor %vm642_vm8, %vm643_vm9  ;;  %v649_v48 = vor.u32 1.1754944e-38, %v648_v26  ;;  %vm647_vm5 = vcmp.eq.f32.partialorder %v646_v18, 8.507059e+37 }
  0xa1   : > { %305 = vst [vmem:[%s2280_s20 + $0x28] sm:$0xff] %v1695_v33  ;;  %v626_v14 = vadd.f32 %v1463_v31, %v625_v55  ;;  %v639_v58 = vsub.f32 1.0, %v638_v6 }
  0xa2   : > { %306 = vst [vmem:[%s2280_s20 + $0x30] sm:$0xff] %v1695_v33 }
  0xa3   : > { %307 = vst [vmem:[%s2280_s20 + $0x38] sm:$0xff] %v1695_v33  ;;  %v630_v39 = vsel %vm2295_vm6, %v1463_v31, %v626_v14  ;;  %v640_v50 = vmul.f32 %v1465_v8, %v639_v58 }
  0xa4   : > { %308 = vst [vmem:[%s2280_s20 + $0x40] sm:$0xff] %v1695_v33  ;;  %v2308_v56 = vsel %vm632_vm0, %v634_v2, %v630_v39 }
  0xa5   : > { %309 = vst [vmem:[%s2280_s20 + $0x48] sm:$0xff] %v1695_v33  ;;  %v641_v4 = vadd.f32 %v1465_v8, %v640_v50 }
  0xa6   : > { %310 = vst [vmem:[%s2280_s20 + $0x50] sm:$0xff] %v1695_v33 }
  0xa7   : > { %311 = vst [vmem:[%s2280_s20 + $0x58] sm:$0xff] %v1695_v33  ;;  %v645_v29 = vsel %vm644_vm15, %v1465_v8, %v641_v4 }
  0xa8   : > { %312 = vst [vmem:[%s2280_s20 + $0x60] sm:$0xff] %v1695_v33  ;;  %v2314_v51 = vsel %vm647_vm5, %v649_v48, %v645_v29 }
  0xa9   : > { %313 = vst [vmem:[%s2280_s20 + $0x68] sm:$0xff] %v1695_v33 }
  0xaa   : > { %314 = vst [vmem:[%s2280_s20 + $0x70] sm:$0xff] %v1695_v33 }
  0xab   : > { %315 = vst [vmem:[%s2280_s20 + $0x78] sm:$0xff] %v1695_v33 }
  0xac   : > { %316 = vst [vmem:[%s2321_s21] sm:$0xff] %v1695_v33 }
  0xad   : > { %317 = vst [vmem:[%s2321_s21 + $0x8] sm:$0xff] %v1695_v33 }
  0xae   : > { %318 = vst [vmem:[%s2321_s21 + $0x10] sm:$0xff] %v1695_v33 }
  0xaf   : > { %319 = vst [vmem:[%s2321_s21 + $0x18] sm:$0xff] %v1695_v33 }
  0xb0   : > { %320 = vst [vmem:[%s2321_s21 + $0x20] sm:$0xff] %v1695_v33 }
  0xb1   : > { %321 = vst [vmem:[%s2321_s21 + $0x28] sm:$0xff] %v1695_v33 }
  0xb2   : > { %322 = vst [vmem:[%s2321_s21 + $0x30] sm:$0xff] %v1695_v33 }
  0xb3   : > { %323 = vst [vmem:[%s2321_s21 + $0x38] sm:$0xff] %v1695_v33 }
  0xb4   : > { %324 = vst [vmem:[%s2321_s21 + $0x40] sm:$0xff] %v1695_v33 }
  0xb5   : > { %325 = vst [vmem:[%s2321_s21 + $0x48] sm:$0xff] %v1695_v33 }
  0xb6   : > { %326 = vst [vmem:[%s2321_s21 + $0x50] sm:$0xff] %v1695_v33 }
  0xb7   : > { %327 = vst [vmem:[%s2321_s21 + $0x58] sm:$0xff] %v1695_v33  ;;  %672 = sbr.rel (%p1294_p6) target bundleno = 224 (0xe0), region = 44 }
  0xb8   : > { %328 = vst [vmem:[%s2321_s21 + $0x60] sm:$0xff] %v1695_v33 }
  0xb9   : > { %329 = vst [vmem:[%s2321_s21 + $0x68] sm:$0xff] %v1695_v33 }
  0xba   : > { %330 = vst [vmem:[%s2321_s21 + $0x70] sm:$0xff] %v1695_v33 }
  0xbb   : > { %331 = vst [vmem:[%s2321_s21 + $0x78] sm:$0xff] %v1695_v33 }
  0xbc   : > { %v673_v22 = vmul.f32 %v2091_v41, %v1978_v12  ;;  %v737_v27 = vld [vmem:[%s2280_s20] sm:$0xff]  ;;  %v674_v53 = vmul.f32 %v2094_v42, %v1992_v19  ;;  %v738_v60 = vld [vmem:[%s2280_s20 + $0x8] sm:$0xff]  ;;  %v675_v0 = vmul.f32 %v2105_v49, %v2006_v21  ;;  %v739_v25 = vld [vmem:[%s2280_s20 + $0x10] sm:$0xff]  ;;  %v676_v54 = vmul.f32 %v2108_v38, %v2020_v23 }
  0xbd   : > { %v740_v62 = vld [vmem:[%s2280_s20 + $0x18] sm:$0xff]  ;;  %v677_v31 = vmul.f32 %v2111_v52, %v2034_v24  ;;  %v741_v57 = vld [vmem:[%s2280_s20 + $0x20] sm:$0xff]  ;;  %v678_v11 = vmul.f32 %v2124_v40, %v2040_v20  ;;  %v742_v45 = vld [vmem:[%s2280_s20 + $0x28] sm:$0xff]  ;;  %v679_v1 = vmul.f32 %v2127_v3, %v2051_v17  ;;  %v680_v8 = vmul.f32 %v2134_v15, %v2193_v34 }
  0xbe   : > { %v753_v43 = vadd.f32 %v737_v27, %v673_v22  ;;  %v754_v32 = vadd.f32 %v738_v60, %v674_v53  ;;  %v755_v33 = vadd.f32 %v739_v25, %v675_v0  ;;  %v756_v35 = vadd.f32 %v740_v62, %v676_v54  ;;  %v743_v63 = vld [vmem:[%s2280_s20 + $0x30] sm:$0xff]  ;;  %v744_v6 = vld [vmem:[%s2280_s20 + $0x38] sm:$0xff]  ;;  %v745_v26 = vld [vmem:[%s2280_s20 + $0x40] sm:$0xff] }
  0xbf   : > { %v757_v55 = vadd.f32 %v741_v57, %v677_v31  ;;  %v681_v37 = vmul.f32 %v2137_v47, %v2222_v13  ;;  %v758_v2 = vadd.f32 %v742_v45, %v678_v11  ;;  %v682_v14 = vmul.f32 %v2140_v9, %v2234_v36  ;;  %v746_v18 = vld [vmem:[%s2280_s20 + $0x48] sm:$0xff]  ;;  %v747_v48 = vld [vmem:[%s2280_s20 + $0x50] sm:$0xff]  ;;  %v748_v22 = vld [vmem:[%s2280_s20 + $0x58] sm:$0xff] }
  0xc0   : > { %769 = vst [vmem:[%s2280_s20] sm:$0xff] %v753_v43  ;;  %v759_v58 = vadd.f32 %v743_v63, %v679_v1  ;;  %v683_v39 = vmul.f32 %v2155_v59, %v2253_v46  ;;  %v760_v50 = vadd.f32 %v744_v6, %v680_v8  ;;  %v684_v4 = vmul.f32 %v2158_v10, %v2266_v61  ;;  %v749_v60 = vld [vmem:[%s2280_s20 + $0x60] sm:$0xff]  ;;  %v750_v54 = vld [vmem:[%s2280_s20 + $0x68] sm:$0xff]  ;;  %v751_v57 = vld [vmem:[%s2280_s20 + $0x70] sm:$0xff] }
  0xc1   : > { %770 = vst [vmem:[%s2280_s20 + $0x8] sm:$0xff] %v754_v32  ;;  %v761_v29 = vadd.f32 %v745_v26, %v681_v37  ;;  %v685_v27 = vmul.f32 %v2164_v7, %v2271_v5  ;;  %v762_v53 = vadd.f32 %v746_v18, %v682_v14  ;;  %v686_v0 = vmul.f32 %v2167_v16, %v2290_v44  ;;  %v752_v32 = vld [vmem:[%s2280_s20 + $0x78] sm:$0xff]  ;;  %v785_v1 = vld [vmem:[%s2321_s21] sm:$0xff]  ;;  %v786_v8 = vld [vmem:[%s2321_s21 + $0x8] sm:$0xff] }
  0xc2   : > { %771 = vst [vmem:[%s2280_s20 + $0x10] sm:$0xff] %v755_v33  ;;  %v763_v25 = vadd.f32 %v747_v48, %v683_v39  ;;  %v687_v62 = vmul.f32 %v2180_v28, %v2308_v56  ;;  %v764_v31 = vadd.f32 %v748_v22, %v684_v4  ;;  %v688_v11 = vmul.f32 %v2183_v30, %v2314_v51  ;;  %v787_v37 = vld [vmem:[%s2321_s21 + $0x10] sm:$0xff]  ;;  %v788_v14 = vld [vmem:[%s2321_s21 + $0x18] sm:$0xff]  ;;  %v789_v39 = vld [vmem:[%s2321_s21 + $0x20] sm:$0xff] }
  0xc3   : > { %772 = vst [vmem:[%s2280_s20 + $0x18] sm:$0xff] %v756_v35  ;;  %v765_v43 = vadd.f32 %v749_v60, %v685_v27  ;;  %v705_v33 = vadd.f32 %v2091_v41, %v1978_v12  ;;  %v766_v45 = vadd.f32 %v750_v54, %v686_v0  ;;  %v706_v35 = vadd.f32 %v2094_v42, %v1992_v19  ;;  %v790_v4 = vld [vmem:[%s2321_s21 + $0x28] sm:$0xff]  ;;  %v791_v27 = vld [vmem:[%s2321_s21 + $0x30] sm:$0xff]  ;;  %v792_v0 = vld [vmem:[%s2321_s21 + $0x38] sm:$0xff] }
  0xc4   : > { %773 = vst [vmem:[%s2280_s20 + $0x20] sm:$0xff] %v757_v55  ;;  %v767_v63 = vadd.f32 %v751_v57, %v687_v62  ;;  %v707_v55 = vadd.f32 %v2105_v49, %v2006_v21  ;;  %v768_v6 = vadd.f32 %v752_v32, %v688_v11  ;;  %v793_v62 = vld [vmem:[%s2321_s21 + $0x40] sm:$0xff]  ;;  %v794_v11 = vld [vmem:[%s2321_s21 + $0x48] sm:$0xff] }
  0xc5   : > { %774 = vst [vmem:[%s2280_s20 + $0x28] sm:$0xff] %v758_v2  ;;  %v708_v2 = vadd.f32 %v2108_v38, %v2020_v23  ;;  %v801_v26 = vadd.f32 %v785_v1, %v705_v33  ;;  %v802_v18 = vadd.f32 %v786_v8, %v706_v35  ;;  %v795_v33 = vld [vmem:[%s2321_s21 + $0x50] sm:$0xff]  ;;  %v796_v35 = vld [vmem:[%s2321_s21 + $0x58] sm:$0xff] }
  0xc6   : > { %775 = vst [vmem:[%s2280_s20 + $0x30] sm:$0xff] %v759_v58  ;;  %v709_v58 = vadd.f32 %v2111_v52, %v2034_v24  ;;  %v803_v48 = vadd.f32 %v787_v37, %v707_v55  ;;  %v797_v55 = vld [vmem:[%s2321_s21 + $0x60] sm:$0xff] }
  0xc7   : > { %776 = vst [vmem:[%s2280_s20 + $0x38] sm:$0xff] %v760_v50  ;;  %v710_v50 = vadd.f32 %v2124_v40, %v2040_v20  ;;  %v804_v22 = vadd.f32 %v788_v14, %v708_v2  ;;  %v798_v2 = vld [vmem:[%s2321_s21 + $0x68] sm:$0xff] }
  0xc8   : > { %777 = vst [vmem:[%s2280_s20 + $0x40] sm:$0xff] %v761_v29  ;;  %v711_v29 = vadd.f32 %v2127_v3, %v2051_v17  ;;  %v805_v60 = vadd.f32 %v789_v39, %v709_v58  ;;  %v799_v58 = vld [vmem:[%s2321_s21 + $0x70] sm:$0xff] }
  0xc9   : > { %778 = vst [vmem:[%s2280_s20 + $0x48] sm:$0xff] %v762_v53  ;;  %v712_v53 = vadd.f32 %v2134_v15, %v2193_v34  ;;  %v806_v54 = vadd.f32 %v790_v4, %v710_v50  ;;  %v800_v50 = vld [vmem:[%s2321_s21 + $0x78] sm:$0xff] }
  0xca   : > { %779 = vst [vmem:[%s2280_s20 + $0x50] sm:$0xff] %v763_v25  ;;  %v713_v25 = vadd.f32 %v2137_v47, %v2222_v13  ;;  %v807_v57 = vadd.f32 %v791_v27, %v711_v29 }
  0xcb   : > { %780 = vst [vmem:[%s2280_s20 + $0x58] sm:$0xff] %v764_v31  ;;  %v714_v31 = vadd.f32 %v2140_v9, %v2234_v36  ;;  %v808_v32 = vadd.f32 %v792_v0, %v712_v53 }
  0xcc   : > { %781 = vst [vmem:[%s2280_s20 + $0x60] sm:$0xff] %v765_v43  ;;  %v715_v43 = vadd.f32 %v2155_v59, %v2253_v46  ;;  %v809_v1 = vadd.f32 %v793_v62, %v713_v25 }
  0xcd   : > { %782 = vst [vmem:[%s2280_s20 + $0x68] sm:$0xff] %v766_v45  ;;  %v716_v45 = vadd.f32 %v2158_v10, %v2266_v61  ;;  %v810_v8 = vadd.f32 %v794_v11, %v714_v31 }
  0xce   : > { %783 = vst [vmem:[%s2280_s20 + $0x70] sm:$0xff] %v767_v63  ;;  %v717_v63 = vadd.f32 %v2164_v7, %v2271_v5  ;;  %v811_v37 = vadd.f32 %v795_v33, %v715_v43 }
  0xcf   : > { %784 = vst [vmem:[%s2280_s20 + $0x78] sm:$0xff] %v768_v6  ;;  %v718_v6 = vadd.f32 %v2167_v16, %v2290_v44  ;;  %v812_v14 = vadd.f32 %v796_v35, %v716_v45 }
  0xd0   : > { %817 = vst [vmem:[%s2321_s21] sm:$0xff] %v801_v26  ;;  %v719_v26 = vadd.f32 %v2180_v28, %v2308_v56  ;;  %v813_v39 = vadd.f32 %v797_v55, %v717_v63 }
  0xd1   : > { %818 = vst [vmem:[%s2321_s21 + $0x8] sm:$0xff] %v802_v18  ;;  %v720_v18 = vadd.f32 %v2183_v30, %v2314_v51 }
  0xd2   : > { %819 = vst [vmem:[%s2321_s21 + $0x10] sm:$0xff] %v803_v48  ;;  %v814_v48 = vadd.f32 %v798_v2, %v718_v6  ;;  %v815_v4 = vadd.f32 %v799_v58, %v719_v26 }
  0xd3   : > { %820 = vst [vmem:[%s2321_s21 + $0x18] sm:$0xff] %v804_v22  ;;  %v816_v29 = vadd.f32 %v800_v50, %v720_v18 }
  0xd4   : > { %821 = vst [vmem:[%s2321_s21 + $0x20] sm:$0xff] %v805_v60 }
  0xd5   : > { %822 = vst [vmem:[%s2321_s21 + $0x28] sm:$0xff] %v806_v54 }
  0xd6   : > { %823 = vst [vmem:[%s2321_s21 + $0x30] sm:$0xff] %v807_v57 }
  0xd7   : > { %824 = vst [vmem:[%s2321_s21 + $0x38] sm:$0xff] %v808_v32 }
  0xd8   : > { %825 = vst [vmem:[%s2321_s21 + $0x40] sm:$0xff] %v809_v1 }
  0xd9   : > { %826 = vst [vmem:[%s2321_s21 + $0x48] sm:$0xff] %v810_v8 }
  0xda   : > { %827 = vst [vmem:[%s2321_s21 + $0x50] sm:$0xff] %v811_v37 }
  0xdb   : > { %828 = vst [vmem:[%s2321_s21 + $0x58] sm:$0xff] %v812_v14 }
  0xdc   : > { %829 = vst [vmem:[%s2321_s21 + $0x60] sm:$0xff] %v813_v39 }
  0xdd   : > { %830 = vst [vmem:[%s2321_s21 + $0x68] sm:$0xff] %v814_v48 }
  0xde   : > { %831 = vst [vmem:[%s2321_s21 + $0x70] sm:$0xff] %v815_v4 }
  0xdf   : > { %832 = vst [vmem:[%s2321_s21 + $0x78] sm:$0xff] %v816_v29 }
  0xe0 PF: > { %p1295_p8 = scmp.lt.s32.totalorder %s1679_s17, 0 }
  0xe1   : > { %s1296_s4 = sshll.u32 (!%p1295_p8), %s1679_s17, 7 }
  0xe2   : > { %836 = sbr.rel (%p1295_p8) target bundleno = 282 (0x11a), region = 48 }
  0xe7   : > { %v837_v22 = vlaneseq  ;;  %v2470_v27 = vstv %s1296_s4  ;;  %v984_v35 = vld [vmem:[%s2280_s20] sm:$0xff]  ;;  %v986_v26 = vld [vmem:[%s2280_s20 + $0x10] sm:$0xff] }
  0xe8   : > { %v988_v4 = vld [vmem:[%s2280_s20 + $0x20] sm:$0xff] }
  0xe9   : > { %v2472_v53 = vshrl.u32 %v837_v22, 7 }
  0xeb   : > { %v856_v60 = vadd.s32 %v2470_v27, %v2472_v53  ;;  %v839_v0 = vadd.s32 8, %v2472_v53  ;;  %v840_v25 = vadd.s32 16, %v2472_v53  ;;  %v841_v54 = vadd.s32 24, %v2472_v53 }
  0xec   : > { %v842_v62 = vadd.s32 32, %v2472_v53  ;;  %v843_v31 = vadd.s32 40, %v2472_v53  ;;  %v844_v57 = vadd.s32 48, %v2472_v53  ;;  %v845_v11 = vadd.s32 56, %v2472_v53 }
  0xed   : > { %vm872_vm14 = vcmp.lt.s32.totalorder %v856_v60, 16  ;;  %v857_v43 = vadd.s32 %v2470_v27, %v839_v0  ;;  %v858_v32 = vadd.s32 %v2470_v27, %v840_v25  ;;  %v859_v33 = vadd.s32 %v2470_v27, %v841_v54  ;;  %v989_v60 = vld [vmem:[%s2280_s20 + $0x28] sm:$0xff] }
  0xee   : > { %v2487_v45 = vsel %vm872_vm14, %v1978_v12, 0.0  ;;  %v2490_v1 = vsel %vm872_vm14, %v2091_v41, 0.0  ;;  %v860_v63 = vadd.s32 %v2470_v27, %v842_v62  ;;  %v861_v8 = vadd.s32 %v2470_v27, %v843_v31  ;;  %v985_v41 = vld [vmem:[%s2280_s20 + $0x8] sm:$0xff] }
  0xef   : > { %v920_v55 = vmul.f32 %v2490_v1, %v2487_v45  ;;  %vm873_vm11 = vcmp.lt.s32.totalorder %v857_v43, 16  ;;  %vm874_vm7 = vcmp.lt.s32.totalorder %v858_v32, 16  ;;  %vm875_vm10 = vcmp.lt.s32.totalorder %v859_v33, 16 }
  0xf0   : > { %v2498_v6 = vsel %vm873_vm11, %v1992_v19, 0.0  ;;  %v2501_v12 = vsel %vm873_vm11, %v2094_v42, 0.0  ;;  %v2505_v37 = vsel %vm874_vm7, %v2006_v21, 0.0  ;;  %v2508_v2 = vsel %vm874_vm7, %v2105_v49, 0.0  ;;  %v987_v21 = vld [vmem:[%s2280_s20 + $0x18] sm:$0xff] }
  0xf1   : > { %v1000_v14 = vadd.f32 %v984_v35, %v920_v55  ;;  %v921_v58 = vmul.f32 %v2501_v12, %v2498_v6  ;;  %v922_v19 = vmul.f32 %v2508_v2, %v2505_v37  ;;  %v2516_v42 = vsel %vm875_vm10, %v2020_v23, 0.0  ;;  %v991_v55 = vld [vmem:[%s2280_s20 + $0x38] sm:$0xff] }
  0xf2   : > { %v2519_v18 = vsel %vm875_vm10, %v2108_v38, 0.0  ;;  %vm876_vm3 = vcmp.lt.s32.totalorder %v860_v63, 16  ;;  %vm877_vm2 = vcmp.lt.s32.totalorder %v861_v8, 16  ;;  %v862_v49 = vadd.s32 %v2470_v27, %v844_v57 }
  0xf3   : > { %1016 = vst [vmem:[%s2280_s20] sm:$0xff] %v1000_v14  ;;  %v1001_v39 = vadd.f32 %v985_v41, %v921_v58  ;;  %v1002_v50 = vadd.f32 %v986_v26, %v922_v19  ;;  %v923_v48 = vmul.f32 %v2519_v18, %v2516_v42  ;;  %v2527_v23 = vsel %vm876_vm3, %v2034_v24, 0.0  ;;  %v992_v14 = vld [vmem:[%s2280_s20 + $0x40] sm:$0xff] }
  0xf4   : > { %v2530_v38 = vsel %vm876_vm3, %v2111_v52, 0.0  ;;  %v2534_v29 = vsel %vm877_vm2, %v2040_v20, 0.0  ;;  %v2537_v22 = vsel %vm877_vm2, %v2124_v40, 0.0  ;;  %vm878_vm13 = vcmp.lt.s32.totalorder %v862_v49, 16  ;;  %v990_v40 = vld [vmem:[%s2280_s20 + $0x30] sm:$0xff]  ;;  %v993_v49 = vld [vmem:[%s2280_s20 + $0x48] sm:$0xff] }
  0xf5   : > { %1017 = vst [vmem:[%s2280_s20 + $0x8] sm:$0xff] %v1001_v39  ;;  %v1003_v0 = vadd.f32 %v987_v21, %v923_v48  ;;  %v924_v25 = vmul.f32 %v2530_v38, %v2527_v23  ;;  %v925_v24 = vmul.f32 %v2537_v22, %v2534_v29  ;;  %v2546_v52 = vsel %vm878_vm13, %v2051_v17, 0.0 }
  0xf6   : > { %1018 = vst [vmem:[%s2280_s20 + $0x10] sm:$0xff] %v1002_v50  ;;  %v2550_v20 = vsel %vm878_vm13, %v2127_v3, 0.0  ;;  %v863_v54 = vadd.s32 %v2470_v27, %v845_v11  ;;  %v846_v62 = vadd.s32 64, %v2472_v53  ;;  %v847_v31 = vadd.s32 72, %v2472_v53 }
  0xf7   : > { %1019 = vst [vmem:[%s2280_s20 + $0x18] sm:$0xff] %v1003_v0  ;;  %v1004_v57 = vadd.f32 %v988_v4, %v924_v25  ;;  %v1005_v43 = vadd.f32 %v989_v60, %v925_v24  ;;  %v926_v17 = vmul.f32 %v2550_v20, %v2546_v52  ;;  %v848_v32 = vadd.s32 80, %v2472_v53 }
  0xf8   : > { %vm879_vm4 = vcmp.lt.s32.totalorder %v863_v54, 16  ;;  %v864_v3 = vadd.s32 %v2470_v27, %v846_v62  ;;  %v865_v11 = vadd.s32 %v2470_v27, %v847_v31  ;;  %v849_v33 = vadd.s32 88, %v2472_v53 }
  0xf9   : > { %1020 = vst [vmem:[%s2280_s20 + $0x20] sm:$0xff] %v1004_v57  ;;  %v1006_v35 = vadd.f32 %v990_v40, %v926_v17  ;;  %v2565_v63 = vsel %vm879_vm4, %v2193_v34, 0.0  ;;  %v2568_v8 = vsel %vm879_vm4, %v2134_v15, 0.0  ;;  %v866_v41 = vadd.s32 %v2470_v27, %v848_v32  ;;  %v1032_v57 = vld [vmem:[%s2321_s21] sm:$0xff] }
  0xfa   : > { %1021 = vst [vmem:[%s2280_s20 + $0x28] sm:$0xff] %v1005_v43  ;;  %v927_v26 = vmul.f32 %v2568_v8, %v2565_v63  ;;  %vm880_vm12 = vcmp.lt.s32.totalorder %v864_v3, 16  ;;  %vm881_vm1 = vcmp.lt.s32.totalorder %v865_v11, 16  ;;  %v867_v58 = vadd.s32 %v2470_v27, %v849_v33 }
  0xfb   : > { %1022 = vst [vmem:[%s2280_s20 + $0x30] sm:$0xff] %v1006_v35  ;;  %v2579_v34 = vsel %vm880_vm12, %v2222_v13, 0.0  ;;  %v2582_v15 = vsel %vm880_vm12, %v2137_v47, 0.0  ;;  %v2585_v19 = vsel %vm881_vm1, %v2234_v36, 0.0  ;;  %v2588_v21 = vsel %vm881_vm1, %v2140_v9, 0.0  ;;  %v994_v36 = vld [vmem:[%s2280_s20 + $0x50] sm:$0xff] }
  0xfc   : > { %v1007_v39 = vadd.f32 %v991_v55, %v927_v26  ;;  %v928_v50 = vmul.f32 %v2582_v15, %v2579_v34  ;;  %v929_v48 = vmul.f32 %v2588_v21, %v2585_v19  ;;  %vm882_vm6 = vcmp.lt.s32.totalorder %v866_v41, 16  ;;  %v997_v35 = vld [vmem:[%s2280_s20 + $0x68] sm:$0xff]  ;;  %v998_v41 = vld [vmem:[%s2280_s20 + $0x70] sm:$0xff] }
  0xfd   : > { %v2596_v47 = vsel %vm882_vm6, %v2253_v46, 0.0  ;;  %v2599_v13 = vsel %vm882_vm6, %v2155_v59, 0.0  ;;  %vm883_vm0 = vcmp.lt.s32.totalorder %v867_v58, 16  ;;  %v850_v9 = vadd.s32 96, %v2472_v53  ;;  %v995_v59 = vld [vmem:[%s2280_s20 + $0x58] sm:$0xff] }
  0xfe   : > { %1023 = vst [vmem:[%s2280_s20 + $0x38] sm:$0xff] %v1007_v39  ;;  %v1008_v4 = vadd.f32 %v992_v14, %v928_v50  ;;  %v1009_v60 = vadd.f32 %v993_v49, %v929_v48  ;;  %v930_v0 = vmul.f32 %v2599_v13, %v2596_v47  ;;  %v2607_v25 = vsel %vm883_vm0, %v2266_v61, 0.0  ;;  %v1034_v49 = vld [vmem:[%s2321_s21 + $0x10] sm:$0xff] }
  0xff   : > { %v2610_v46 = vsel %vm883_vm0, %v2158_v10, 0.0  ;;  %v868_v24 = vadd.s32 %v2470_v27, %v850_v9  ;;  %v851_v40 = vadd.s32 104, %v2472_v53  ;;  %v852_v54 = vadd.s32 112, %v2472_v53 }
 0x100   : > { %1024 = vst [vmem:[%s2280_s20 + $0x40] sm:$0xff] %v1008_v4  ;;  %v1010_v62 = vadd.f32 %v994_v36, %v930_v0  ;;  %v931_v31 = vmul.f32 %v2610_v46, %v2607_v25  ;;  %v853_v61 = vadd.s32 120, %v2472_v53  ;;  %v952_v10 = vadd.f32 %v2490_v1, %v2487_v45  ;;  %v996_v1 = vld [vmem:[%s2280_s20 + $0x60] sm:$0xff] }
 0x101   : > { %1025 = vst [vmem:[%s2280_s20 + $0x48] sm:$0xff] %v1009_v60  ;;  %vm884_vm8 = vcmp.lt.s32.totalorder %v868_v24, 16  ;;  %v869_v43 = vadd.s32 %v2470_v27, %v851_v40  ;;  %v870_v17 = vadd.s32 %v2470_v27, %v852_v54  ;;  %v953_v32 = vadd.f32 %v2501_v12, %v2498_v6  ;;  %v1033_v12 = vld [vmem:[%s2321_s21 + $0x8] sm:$0xff]  ;;  %v1036_v4 = vld [vmem:[%s2321_s21 + $0x20] sm:$0xff] }
 0x102   : > { %1026 = vst [vmem:[%s2280_s20 + $0x50] sm:$0xff] %v1010_v62  ;;  %v1011_v3 = vadd.f32 %v995_v59, %v931_v31  ;;  %v2630_v53 = vsel %vm884_vm8, %v2271_v5, 0.0  ;;  %v2633_v45 = vsel %vm884_vm8, %v2164_v7, 0.0  ;;  %v871_v11 = vadd.s32 %v2470_v27, %v853_v61 }
 0x103   : > { %v932_v33 = vmul.f32 %v2633_v45, %v2630_v53  ;;  %vm885_vm9 = vcmp.lt.s32.totalorder %v869_v43, 16  ;;  %vm886_vm15 = vcmp.lt.s32.totalorder %v870_v17, 16  ;;  %v1048_v6 = vadd.f32 %v1032_v57, %v952_v10  ;;  %v1045_v10 = vld [vmem:[%s2321_s21 + $0x68] sm:$0xff]  ;;  %v1046_v57 = vld [vmem:[%s2321_s21 + $0x70] sm:$0xff] }
 0x104   : > { %1027 = vst [vmem:[%s2280_s20 + $0x58] sm:$0xff] %v1011_v3  ;;  %v901_v5 = vsel %vm885_vm9, %v2290_v44, 0.0  ;;  %v917_v7 = vsel %vm885_vm9, %v2167_v16, 0.0  ;;  %v902_v27 = vsel %vm886_vm15, %v2308_v56, 0.0  ;;  %v918_v55 = vsel %vm886_vm15, %v2180_v28, 0.0  ;;  %v999_v16 = vld [vmem:[%s2280_s20 + $0x78] sm:$0xff] }
 0x105   : > { %v1012_v26 = vadd.f32 %v996_v1, %v932_v33  ;;  %v933_v14 = vmul.f32 %v917_v7, %v901_v5  ;;  %v934_v58 = vmul.f32 %v918_v55, %v902_v27  ;;  %vm887_vm5 = vcmp.lt.s32.totalorder %v871_v11, 16  ;;  %1064 = vst [vmem:[%s2321_s21] sm:$0xff] %v1048_v6  ;;  %v1035_v56 = vld [vmem:[%s2321_s21 + $0x18] sm:$0xff] }
 0x106   : > { %v903_v39 = vsel %vm887_vm5, %v2314_v51, 0.0  ;;  %v919_v44 = vsel %vm887_vm5, %v2183_v30, 0.0  ;;  %v1049_v50 = vadd.f32 %v1033_v12, %v953_v32  ;;  %v954_v28 = vadd.f32 %v2508_v2, %v2505_v37  ;;  %v1037_v2 = vld [vmem:[%s2321_s21 + $0x28] sm:$0xff]  ;;  %v1047_v32 = vld [vmem:[%s2321_s21 + $0x78] sm:$0xff] }
 0x107   : > { %1028 = vst [vmem:[%s2280_s20 + $0x60] sm:$0xff] %v1012_v26  ;;  %v1013_v48 = vadd.f32 %v997_v35, %v933_v14  ;;  %v1014_v36 = vadd.f32 %v998_v41, %v934_v58  ;;  %v935_v9 = vmul.f32 %v919_v44, %v903_v39  ;;  %v955_v51 = vadd.f32 %v2519_v18, %v2516_v42  ;;  %v1038_v18 = vld [vmem:[%s2321_s21 + $0x30] sm:$0xff] }
 0x108   : > { %1065 = vst [vmem:[%s2321_s21 + $0x8] sm:$0xff] %v1049_v50  ;;  %v1050_v30 = vadd.f32 %v1034_v49, %v954_v28  ;;  %v956_v60 = vadd.f32 %v2530_v38, %v2527_v23  ;;  %v957_v37 = vadd.f32 %v2537_v22, %v2534_v29  ;;  %v958_v0 = vadd.f32 %v2550_v20, %v2546_v52  ;;  %v1039_v38 = vld [vmem:[%s2321_s21 + $0x38] sm:$0xff]  ;;  %v1040_v52 = vld [vmem:[%s2321_s21 + $0x40] sm:$0xff] }
 0x109   : > { %1029 = vst [vmem:[%s2280_s20 + $0x68] sm:$0xff] %v1013_v48  ;;  %v1015_v59 = vadd.f32 %v999_v16, %v935_v9  ;;  %v1051_v42 = vadd.f32 %v1035_v56, %v955_v51  ;;  %v959_v24 = vadd.f32 %v2568_v8, %v2565_v63  ;;  %v960_v29 = vadd.f32 %v2582_v15, %v2579_v34  ;;  %v1041_v63 = vld [vmem:[%s2321_s21 + $0x48] sm:$0xff]  ;;  %v1042_v34 = vld [vmem:[%s2321_s21 + $0x50] sm:$0xff] }
 0x10a   : > { %1030 = vst [vmem:[%s2280_s20 + $0x70] sm:$0xff] %v1014_v36  ;;  %v1052_v23 = vadd.f32 %v1036_v4, %v956_v60  ;;  %v1053_v22 = vadd.f32 %v1037_v2, %v957_v37  ;;  %v961_v20 = vadd.f32 %v2588_v21, %v2585_v19  ;;  %v1054_v40 = vadd.f32 %v1038_v18, %v958_v0  ;;  %v1043_v19 = vld [vmem:[%s2321_s21 + $0x58] sm:$0xff] }
 0x10b   : > { %1031 = vst [vmem:[%s2280_s20 + $0x78] sm:$0xff] %v1015_v59  ;;  %v962_v8 = vadd.f32 %v2599_v13, %v2596_v47  ;;  %v1055_v54 = vadd.f32 %v1039_v38, %v959_v24  ;;  %v963_v15 = vadd.f32 %v2610_v46, %v2607_v25  ;;  %v1056_v62 = vadd.f32 %v1040_v52, %v960_v29  ;;  %v1044_v47 = vld [vmem:[%s2321_s21 + $0x60] sm:$0xff] }
 0x10c   : > { %1066 = vst [vmem:[%s2321_s21 + $0x10] sm:$0xff] %v1050_v30  ;;  %v964_v21 = vadd.f32 %v2633_v45, %v2630_v53  ;;  %v1057_v31 = vadd.f32 %v1041_v63, %v961_v20  ;;  %v965_v13 = vadd.f32 %v917_v7, %v901_v5  ;;  %v966_v25 = vadd.f32 %v918_v55, %v902_v27 }
 0x10d   : > { %1067 = vst [vmem:[%s2321_s21 + $0x18] sm:$0xff] %v1051_v42  ;;  %v1058_v61 = vadd.f32 %v1042_v34, %v962_v8  ;;  %v1059_v46 = vadd.f32 %v1043_v19, %v963_v15  ;;  %v967_v43 = vadd.f32 %v919_v44, %v903_v39 }
 0x10e   : > { %1068 = vst [vmem:[%s2321_s21 + $0x20] sm:$0xff] %v1052_v23  ;;  %v1060_v17 = vadd.f32 %v1044_v47, %v964_v21  ;;  %v1061_v3 = vadd.f32 %v1045_v10, %v965_v13  ;;  %v1062_v53 = vadd.f32 %v1046_v57, %v966_v25 }
 0x10f   : > { %1069 = vst [vmem:[%s2321_s21 + $0x28] sm:$0xff] %v1053_v22  ;;  %v1063_v45 = vadd.f32 %v1047_v32, %v967_v43 }
 0x110   : > { %1070 = vst [vmem:[%s2321_s21 + $0x30] sm:$0xff] %v1054_v40 }
 0x111   : > { %1071 = vst [vmem:[%s2321_s21 + $0x38] sm:$0xff] %v1055_v54 }
 0x112   : > { %1072 = vst [vmem:[%s2321_s21 + $0x40] sm:$0xff] %v1056_v62 }
 0x113   : > { %1073 = vst [vmem:[%s2321_s21 + $0x48] sm:$0xff] %v1057_v31 }
 0x114   : > { %1074 = vst [vmem:[%s2321_s21 + $0x50] sm:$0xff] %v1058_v61 }
 0x115   : > { %1075 = vst [vmem:[%s2321_s21 + $0x58] sm:$0xff] %v1059_v46 }
 0x116   : > { %1076 = vst [vmem:[%s2321_s21 + $0x60] sm:$0xff] %v1060_v17 }
 0x117   : > { %1077 = vst [vmem:[%s2321_s21 + $0x68] sm:$0xff] %v1061_v3 }
 0x118   : > { %1078 = vst [vmem:[%s2321_s21 + $0x70] sm:$0xff] %v1062_v53 }
 0x119   : > { %1079 = vst [vmem:[%s2321_s21 + $0x78] sm:$0xff] %v1063_v45 }
 0x11a PF: > { %s1307_s23 = sshll.u32 %s1679_s17, 7  ;;  %s1098_s5 = sshll.u32 %s2280_s20, 4  ;;  %s1099_s5 = int_to_ptr.vmem [resolvable:$true] %s1098_s5 }
 0x11b   : > { %s1097_s26 = scalar_lea.hbm %s2767_s2, %s1307_s23  ;;  %s1081_s10 = scalar_lea.sflag [#allocation4], %s2226_s24 }
 0x11c   : > { %s1100_s9 = sshll.u32 %s1097_s26, 4  ;;  %s1564_s17 = scalar_lea.hbm %s2767_s2, 256  ;;  %s1101_s9 = int_to_ptr.hbm [resolvable:$true] %s1100_s9 }
 0x11d   : > { %s1558_s30 = sshra.s32 %s1101_s9, 4  ;;  %s1559_s30 = int_to_ptr.hbm [resolvable:$true] %s1558_s30 }
 0x11e   : > { %s1560_s6 = scalar_lea.hbm %s1559_s30, 128  ;;  %p1565_p4 = scmp.lt.s32.totalorder %s1559_s30, %s2767_s2 }
 0x11f   : > { %p1561_p9 = scmp.ne.s32.totalorder %s1559_s30, %s1560_s6  ;;  %p1566_p1 = scmp.lt.s32.totalorder %s1564_s17, %s1560_s6 }
 0x121   : > { %p1562_p10 = pnand %p1561_p9, %p1782_p12  ;;  %p1567_p2 = por %p1566_p1, %p1565_p4 }
 0x123   : > { %p1563_p11 = pneg %p1562_p10 }
 0x125   : > { %p1568_p3 = pnand %p1567_p2, %p1563_p11 }
 0x127   : > { %1571 = shalt.err (!%p1568_p3)
}
 0x128   : > { %s1696_s20 = smov 128   ;;  %s1697_s7 = smov 8  }
 0x129   : > { %1311 = dma.vmem_to_hbm [thread:$0]  (%p1782_p12), %s1099_s5, 2048, %s1101_s9, %s1081_s10, %s1696_s20, %s1696_s20, %s1697_s7  }
 0x12a   : > { %s1114_s8 = scalar_lea.hbm %s2768_s3, %s1307_s23  ;;  %s1115_s11 = sshll.u32 %s2321_s21, 4  ;;  %s1116_s11 = int_to_ptr.vmem [resolvable:$true] %s1115_s11 }
 0x12b   : > { %s1117_s15 = sshll.u32 %s1114_s8, 4  ;;  %s1086_s30 = scalar_lea.sflag [#allocation9], %s2226_s24  ;;  %s1118_s15 = int_to_ptr.hbm [resolvable:$true] %s1117_s15 }
 0x12c   : > { %s1586_s6 = sshra.s32 %s1118_s15, 4  ;;  %s1592_s5 = scalar_lea.hbm %s2768_s3, 256  ;;  %s1587_s6 = int_to_ptr.hbm [resolvable:$true] %s1586_s6 }
 0x12d   : > { %s1588_s17 = scalar_lea.hbm %s1587_s6, 128  ;;  %p1593_p8 = scmp.lt.s32.totalorder %s1587_s6, %s2768_s3 }
 0x12e   : > { %p1589_p5 = scmp.ne.s32.totalorder %s1587_s6, %s1588_s17  ;;  %p1594_p9 = scmp.lt.s32.totalorder %s1592_s5, %s1588_s17 }
 0x130   : > { %p1590_p7 = pnand %p1589_p5, %p1782_p12  ;;  %p1595_p10 = por %p1594_p9, %p1593_p8 }
 0x132   : > { %p1591_p6 = pneg %p1590_p7 }
 0x134   : > { %p1596_p11 = pnand %p1595_p10, %p1591_p6 }
 0x136   : > { %1599 = shalt.err (!%p1596_p11)
}
 0x137   : > { %1312 = dma.vmem_to_hbm [thread:$0]  (%p1782_p12), %s1116_s11, 2048, %s1118_s15, %s1086_s30, %s1696_s20, %s1696_s20, %s1697_s7  }
 0x138 PF: > { %s1132_s24 = sand.u32 1, %s1659_s12   ;;  %p1316_p4 = pnand %p1258_p0, %p1786_p13 }
 0x139   : > { %s1133_s0 = scalar_lea.sflag [#allocation4], %s1132_s24 }
 0x13a   : > { %p1317_p1 = pneg %p1316_p4 }
 0x13c   : > { %1645 = dma.done.wait (%p1317_p1), %s1133_s0, 2048  }
 0x13d   : > { %1647 = vsyncadd (%p1317_p1), %s1133_s0, 4294965248  ;;  %s1143_s21 = scalar_lea.sflag [#allocation9], %s1132_s24 }
 0x13e   : > { %1649 = dma.done.wait (%p1317_p1), %s1143_s21, 2048  }
 0x13f   : > { %1651 = vsyncadd (%p1317_p1), %s1143_s21, 4294965248  ;;  %s26_s19 = sadd.s32 1, %s1687_s19   ;;  %s2836_s12 = smov %s1663_s13 }
 0x140   : > { %p23_p2 = scmp.ge.s32.totalorder %s26_s19, 4   ;;  %s2837_s13 = smov %s1667_s14 }
 0x141   : > { %s2838_s14 = smov %s1776_s27  ;;  %s2839_s15 = smov %s1675_s16 }
 0x142   : > { %s2755_s16 = smov 0   ;;  %s2840_s17 = smov %s1683_s18 }
 0x143   : > { %s2841_s18 = smov %s2843_s22  ;;  %25 = sbr.rel (!%p23_p2) target bundleno = 13 (0xd), region = 115 }
 0x148   :  { %1149 = vsyncpa [#allocation3], 1 }
 0x149   :  { %1151 = vsyncpa [#allocation3 + $0x1], 1 }
 0x14a   :  { %1152 = vsyncpa [#allocation6], 1 }
 0x14b   :  { %1154 = vsyncpa [#allocation6 + $0x1], 1 }
 0x14c   :  { %1155 = vsyncpa [#allocation4], 1 }
 0x14d   :  { %1157 = vsyncpa [#allocation4 + $0x1], 1 }
 0x14e   :  { %1158 = vsyncpa [#allocation9], 1 }
 0x14f   :  { %1160 = vsyncpa [#allocation9 + $0x1], 1 }

</bundles_post_ra>
